<compile_context>
chip_gen: v5e
topology: v5e:2x2
jax: 0.10.0
libtpu: 0.0.40
codegen_flags: <defaults>
</compile_context>

<pallas_src>
import jax
import jax.numpy as jnp
from jax import lax
from jax.experimental import pallas as pl
from jax.experimental.pallas import tpu as pltpu


def decoder_kernel(tok_ref,                         # SMEM (T,) int32
                   emb_ref,                         # (V, H)  embedding table
                   wih0_ref, whh0_ref, b0_ref,      # layer0: (H,4H), (H,4H), (1,4H)
                   wih1_ref, whh1_ref, b1_ref,      # layer1: (H,4H), (H,4H), (1,4H)
                   wfc_ref, bfc_ref,                # fc: (H, Vp), (1, Vp)  (V padded)
                   hinit_ref, cinit_ref,            # initial state: (2, H) each
                   logp_ref,                        # out: (Tp, Vp) log-softmax rows
                   hid_out_ref, cell_out_ref,       # out: (2, H) final state
                   x_scr,                           # VMEM (Tp, H)  gathered embeddings
                   xw0_scr,                         # VMEM (Tp, 4H) precomputed x@Wih0+b0
                   h1_scr):                         # VMEM (Tp, H)  per-step layer-1 outputs
    T = tok_ref.shape[0]
    H = hinit_ref.shape[-1]

    # Deterministic padded rows (t >= T) for the batched matmuls.
    x_scr[...] = jnp.zeros_like(x_scr)
    h1_scr[...] = jnp.zeros_like(h1_scr)

    # ---- batched embedding gather (nn.Dropout = identity in eval mode) ----
    def gather(t, carry):
        idx = tok_ref[t]
        x_scr[pl.ds(t, 1), :] = emb_ref[pl.ds(idx, 1), :]
        return carry

    lax.fori_loop(0, T, gather, 0, unroll=True)

    # ---- batched layer-0 input projection, off the serial recurrence ----
    xw0_scr[...] = (jnp.dot(x_scr[...], wih0_ref[...],
                            preferred_element_type=jnp.float32) + b0_ref[...])

    # Gate lane mask (PyTorch gate order i, f, g, o), hoisted out of the loop.
    lane = lax.broadcasted_iota(jnp.int32, (1, 4 * H), 1)
    g_mask = (lane >= 2 * H) & (lane < 3 * H)

    def gate_act(gates, c):
        # One tanh-class EUP pass over (1, 4H): sigmoid(x) = 0.5*(tanh(x/2)+1).
        scaled = jnp.where(g_mask, gates, 0.5 * gates)
        th = jnp.tanh(scaled)
        act = jnp.where(g_mask, th, 0.5 * (th + 1.0))
        i = act[:, 0 * H:1 * H]
        f = act[:, 1 * H:2 * H]
        g = act[:, 2 * H:3 * H]
        o = act[:, 3 * H:4 * H]
        c_new = f * c + i * g
        h_new = o * jnp.tanh(c_new)
        return h_new, c_new

    def step(t, carry):
        h0, c0, h1, c1 = carry
        # layer 0: precomputed input part + recurrent part (no concat).
        g0 = xw0_scr[pl.ds(t, 1), :] + jnp.dot(
            h0, whh0_ref[...], preferred_element_type=jnp.float32)
        h0n, c0n = gate_act(g0, c0)
        # TODO(synk): inter-layer LSTM dropout (training mode) skipped; eval semantics.
        # layer 1: two small dots instead of concat + fused dot.
        g1 = (jnp.dot(h0n, wih1_ref[...], preferred_element_type=jnp.float32)
              + jnp.dot(h1, whh1_ref[...], preferred_element_type=jnp.float32)
              + b1_ref[...])
        h1n, c1n = gate_act(g1, c1)
        h1_scr[pl.ds(t, 1), :] = h1n
        return (h0n, c0n, h1n, c1n)

    init = (hinit_ref[0:1, :], cinit_ref[0:1, :],
            hinit_ref[1:2, :], cinit_ref[1:2, :])
    h0, c0, h1, c1 = lax.fori_loop(0, T, step, init, unroll=True)

    # Final recurrent state, written once.
    hid_out_ref[0:1, :] = h0
    hid_out_ref[1:2, :] = h1
    cell_out_ref[0:1, :] = c0
    cell_out_ref[1:2, :] = c1

    # ---- deferred fc + batched log-softmax (padded cols carry -1e30 bias) ----
    logits = (jnp.dot(h1_scr[...], wfc_ref[...],
                      preferred_element_type=jnp.float32) + bfc_ref[...])   # (Tp, Vp)
    m = jnp.max(logits, axis=-1, keepdims=True)
    lse = m + jnp.log(jnp.sum(jnp.exp(logits - m), axis=-1, keepdims=True))
    logp_ref[...] = logits - lse


def decoder_forward(tokens, params, hidden, cell):
    """Run T teacher-forced Decoder.forward steps in one pallas_call.

    tokens : (T,) int32 word indices
    hidden / cell : (2, 1, H) float32 (nn.LSTM layout, num_layers=2)
    returns (log_probs (T, V), hidden (2,1,H), cell (2,1,H))

    NOTE: the wrapper assumes LSTM weights are pre-transposed to (in, 4H) and
    per-layer biases pre-summed (b = b_ih + b_hh), as produced below.
    """
    V, H = params["emb"].shape
    T = tokens.shape[0]
    Vp = max(128, pl.cdiv(V, 128) * 128)     # lane-dense vocab
    Tp = max(8, pl.cdiv(T, 8) * 8)           # sublane-aligned time axis

    # Pad fc weight/bias so the logits slab is lane-dense; padded bias -1e30
    # so exp() == 0 after max-subtraction in the log-softmax.
    wfc = jnp.pad(params["wfc"], ((0, 0), (0, Vp - V)))
    bfc = jnp.pad(params["bfc"], ((0, 0), (0, Vp - V)), constant_values=-1e30)

    vmem = pl.BlockSpec(memory_space=pltpu.MemorySpace.VMEM)
    smem = pl.BlockSpec(memory_space=pltpu.MemorySpace.SMEM)

    logp_padded, hid_new, cell_new = pl.pallas_call(
        decoder_kernel,
        out_shape=(
            jax.ShapeDtypeStruct((Tp, Vp), jnp.float32),
            jax.ShapeDtypeStruct((2, H), jnp.float32),
            jax.ShapeDtypeStruct((2, H), jnp.float32),
        ),
        in_specs=[smem] + [vmem] * 11,
        out_specs=(vmem, vmem, vmem),
        scratch_shapes=[
            pltpu.VMEM((Tp, H), jnp.float32),        # gathered embeddings
            pltpu.VMEM((Tp, 4 * H), jnp.float32),    # precomputed x@Wih0 + b0
            pltpu.VMEM((Tp, H), jnp.float32),        # per-step h1 outputs
        ],
    )(tokens.astype(jnp.int32),
      params["emb"].astype(jnp.float32),
      params["wih0"], params["whh0"], params["b0"],
      params["wih1"], params["whh1"], params["b1"],
      wfc, bfc,
      hidden.reshape(2, H).astype(jnp.float32),
      cell.reshape(2, H).astype(jnp.float32))

    return (logp_padded[:T, :V],
            hid_new.reshape(2, 1, H),
            cell_new.reshape(2, 1, H))


# ----------------------- pure-JAX reference for checking -----------------------
def decoder_reference(tokens, params, hidden, cell):
    H = hidden.shape[-1]

    def cell_fn(xin, h, c, wih, whh, b):
        g = xin @ wih + h @ whh + b
        i = jax.nn.sigmoid(g[:, 0 * H:1 * H])
        f = jax.nn.sigmoid(g[:, 1 * H:2 * H])
        gg = jnp.tanh(g[:, 2 * H:3 * H])
        o = jax.nn.sigmoid(g[:, 3 * H:4 * H])
        c_new = f * c + i * gg
        return o * jnp.tanh(c_new), c_new

    outs = []
    for t in range(tokens.shape[0]):
        x = params["emb"][tokens[t]][None, :]
        h0n, c0n = cell_fn(x, hidden[0], cell[0],
                           params["wih0"], params["whh0"], params["b0"])
        h1n, c1n = cell_fn(h0n, hidden[1], cell[1],
                           params["wih1"], params["whh1"], params["b1"])
        logits = h1n @ params["wfc"] + params["bfc"]
        outs.append(jax.nn.log_softmax(logits, axis=1))
        hidden = jnp.stack([h0n, h1n])
        cell = jnp.stack([c0n, c1n])
    return jnp.concatenate(outs, axis=0), hidden, cell


if __name__ == "__main__":
    # Module hyper-params (small, consistent with the forward pass):
    #   output_size (vocab) = 64, hidden_size = embedding_size = 32, dropout = 0.1
    V, H, T = 64, 32, 8
    key = jax.random.PRNGKey(0)
    ks = jax.random.split(key, 16)
    bound = 1.0 / jnp.sqrt(H)

    def uni(k, shape):
        return jax.random.uniform(k, shape, jnp.float32, -bound, bound)

    params = {
        "emb":  jax.random.normal(ks[0], (V, H), jnp.float32),
        # LSTM layer 0 (weights stored transposed: (in, 4H)); b = b_ih + b_hh
        "wih0": uni(ks[1], (H, 4 * H)),
        "whh0": uni(ks[2], (H, 4 * H)),
        "b0":   uni(ks[3], (1, 4 * H)) + uni(ks[4], (1, 4 * H)),
        # LSTM layer 1
        "wih1": uni(ks[5], (H, 4 * H)),
        "whh1": uni(ks[6], (H, 4 * H)),
        "b1":   uni(ks[7], (1, 4 * H)) + uni(ks[8], (1, 4 * H)),
        # fc
        "wfc":  uni(ks[9], (H, V)),
        "bfc":  uni(ks[10], (1, V)),
    }

    tokens = jax.random.randint(ks[13], (T,), 0, V).astype(jnp.int32)
    hidden = jax.random.normal(ks[11], (2, 1, H), jnp.float32)   # (num_layers, 1, H)
    cell = jax.random.normal(ks[12], (2, 1, H), jnp.float32)

    out, hid_new, cell_new = decoder_forward(tokens, params, hidden, cell)
    jax.block_until_ready((out, hid_new, cell_new))

    ref_out, ref_hid, ref_cell = decoder_reference(tokens, params, hidden, cell)
    assert out.shape == (T, V)
    assert jnp.allclose(out, ref_out, atol=1e-4), "log-softmax output mismatch"
    assert jnp.allclose(hid_new, ref_hid, atol=1e-4), "hidden state mismatch"
    assert jnp.allclose(cell_new, ref_cell, atol=1e-4), "cell state mismatch"

    print("KERNEL_OK")
</pallas_src>

<mosaic_0001>
module attributes {stable_mosaic.version = 11 : i64} {
  func.func @decoder_kernel(%arg0: memref<8xi32, #tpu.memory_space<smem>>, %arg1: memref<64x32xf32, #tpu.memory_space<vmem>>, %arg2: memref<32x128xf32, #tpu.memory_space<vmem>>, %arg3: memref<32x128xf32, #tpu.memory_space<vmem>>, %arg4: memref<1x128xf32, #tpu.memory_space<vmem>>, %arg5: memref<32x128xf32, #tpu.memory_space<vmem>>, %arg6: memref<32x128xf32, #tpu.memory_space<vmem>>, %arg7: memref<1x128xf32, #tpu.memory_space<vmem>>, %arg8: memref<32x128xf32, #tpu.memory_space<vmem>>, %arg9: memref<1x128xf32, #tpu.memory_space<vmem>>, %arg10: memref<2x32xf32, #tpu.memory_space<vmem>>, %arg11: memref<2x32xf32, #tpu.memory_space<vmem>>, %arg12: memref<8x128xf32, #tpu.memory_space<vmem>>, %arg13: memref<2x32xf32, #tpu.memory_space<vmem>>, %arg14: memref<2x32xf32, #tpu.memory_space<vmem>>, %arg15: memref<8x32xf32, #tpu.memory_space<vmem>>, %arg16: memref<8x128xf32, #tpu.memory_space<vmem>>, %arg17: memref<8x32xf32, #tpu.memory_space<vmem>>) attributes {dimension_semantics = [], scalar_prefetch = 0 : i64, scratch_operands = 3 : i64, tpu.core_type = #tpu.core_type<tc>} {
    %cst = arith.constant 0.000000e+00 : f32
    %0 = vector.broadcast %cst : f32 to vector<8x32xf32>
    %c0 = arith.constant 0 : index
    %c0_0 = arith.constant 0 : index
    %1 = vector.load %arg15[%c0, %c0_0] : memref<8x32xf32, #tpu.memory_space<vmem>>, vector<8x32xf32>
    tpu.vector_store %arg15[%c0, %c0_0], %0 {strides = array<i32>} : memref<8x32xf32, #tpu.memory_space<vmem>>, vector<8x32xf32>,
    %cst_1 = arith.constant 0.000000e+00 : f32
    %2 = vector.broadcast %cst_1 : f32 to vector<8x32xf32>
    %c0_2 = arith.constant 0 : index
    %c0_3 = arith.constant 0 : index
    %3 = vector.load %arg17[%c0_2, %c0_3] : memref<8x32xf32, #tpu.memory_space<vmem>>, vector<8x32xf32>
    tpu.vector_store %arg17[%c0_2, %c0_3], %2 {strides = array<i32>} : memref<8x32xf32, #tpu.memory_space<vmem>>, vector<8x32xf32>,
    %c0_i32 = arith.constant 0 : i32
    %4 = arith.index_cast %c0_i32 : i32 to index
    %5 = memref.load %arg0[%4] : memref<8xi32, #tpu.memory_space<smem>>
    %6 = arith.index_cast %5 : i32 to index
    %c0_4 = arith.constant 0 : index
    %7 = vector.load %arg1[%6, %c0_4] : memref<64x32xf32, #tpu.memory_space<vmem>>, vector<1x32xf32>
    %8 = arith.index_cast %c0_i32 : i32 to index
    %c0_5 = arith.constant 0 : index
    %9 = vector.load %arg15[%8, %c0_5] : memref<8x32xf32, #tpu.memory_space<vmem>>, vector<1x32xf32>
    tpu.vector_store %arg15[%8, %c0_5], %7 {strides = array<i32>} : memref<8x32xf32, #tpu.memory_space<vmem>>, vector<1x32xf32>,
    %c1_i32 = arith.constant 1 : i32
    %10 = arith.index_cast %c1_i32 : i32 to index
    %11 = memref.load %arg0[%10] : memref<8xi32, #tpu.memory_space<smem>>
    %12 = arith.index_cast %11 : i32 to index
    %c0_6 = arith.constant 0 : index
    %13 = vector.load %arg1[%12, %c0_6] : memref<64x32xf32, #tpu.memory_space<vmem>>, vector<1x32xf32>
    %14 = arith.index_cast %c1_i32 : i32 to index
    %c0_7 = arith.constant 0 : index
    %15 = vector.load %arg15[%14, %c0_7] : memref<8x32xf32, #tpu.memory_space<vmem>>, vector<1x32xf32>
    tpu.vector_store %arg15[%14, %c0_7], %13 {strides = array<i32>} : memref<8x32xf32, #tpu.memory_space<vmem>>, vector<1x32xf32>,
    %c2_i32 = arith.constant 2 : i32
    %16 = arith.index_cast %c2_i32 : i32 to index
    %17 = memref.load %arg0[%16] : memref<8xi32, #tpu.memory_space<smem>>
    %18 = arith.index_cast %17 : i32 to index
    %c0_8 = arith.constant 0 : index
    %19 = vector.load %arg1[%18, %c0_8] : memref<64x32xf32, #tpu.memory_space<vmem>>, vector<1x32xf32>
    %20 = arith.index_cast %c2_i32 : i32 to index
    %c0_9 = arith.constant 0 : index
    %21 = vector.load %arg15[%20, %c0_9] : memref<8x32xf32, #tpu.memory_space<vmem>>, vector<1x32xf32>
    tpu.vector_store %arg15[%20, %c0_9], %19 {strides = array<i32>} : memref<8x32xf32, #tpu.memory_space<vmem>>, vector<1x32xf32>,
    %c3_i32 = arith.constant 3 : i32
    %22 = arith.index_cast %c3_i32 : i32 to index
    %23 = memref.load %arg0[%22] : memref<8xi32, #tpu.memory_space<smem>>
    %24 = arith.index_cast %23 : i32 to index
    %c0_10 = arith.constant 0 : index
    %25 = vector.load %arg1[%24, %c0_10] : memref<64x32xf32, #tpu.memory_space<vmem>>, vector<1x32xf32>
    %26 = arith.index_cast %c3_i32 : i32 to index
    %c0_11 = arith.constant 0 : index
    %27 = vector.load %arg15[%26, %c0_11] : memref<8x32xf32, #tpu.memory_space<vmem>>, vector<1x32xf32>
    tpu.vector_store %arg15[%26, %c0_11], %25 {strides = array<i32>} : memref<8x32xf32, #tpu.memory_space<vmem>>, vector<1x32xf32>,
    %c4_i32 = arith.constant 4 : i32
    %28 = arith.index_cast %c4_i32 : i32 to index
    %29 = memref.load %arg0[%28] : memref<8xi32, #tpu.memory_space<smem>>
    %30 = arith.index_cast %29 : i32 to index
    %c0_12 = arith.constant 0 : index
    %31 = vector.load %arg1[%30, %c0_12] : memref<64x32xf32, #tpu.memory_space<vmem>>, vector<1x32xf32>
    %32 = arith.index_cast %c4_i32 : i32 to index
    %c0_13 = arith.constant 0 : index
    %33 = vector.load %arg15[%32, %c0_13] : memref<8x32xf32, #tpu.memory_space<vmem>>, vector<1x32xf32>
    tpu.vector_store %arg15[%32, %c0_13], %31 {strides = array<i32>} : memref<8x32xf32, #tpu.memory_space<vmem>>, vector<1x32xf32>,
    %c5_i32 = arith.constant 5 : i32
    %34 = arith.index_cast %c5_i32 : i32 to index
    %35 = memref.load %arg0[%34] : memref<8xi32, #tpu.memory_space<smem>>
    %36 = arith.index_cast %35 : i32 to index
    %c0_14 = arith.constant 0 : index
    %37 = vector.load %arg1[%36, %c0_14] : memref<64x32xf32, #tpu.memory_space<vmem>>, vector<1x32xf32>
    %38 = arith.index_cast %c5_i32 : i32 to index
    %c0_15 = arith.constant 0 : index
    %39 = vector.load %arg15[%38, %c0_15] : memref<8x32xf32, #tpu.memory_space<vmem>>, vector<1x32xf32>
    tpu.vector_store %arg15[%38, %c0_15], %37 {strides = array<i32>} : memref<8x32xf32, #tpu.memory_space<vmem>>, vector<1x32xf32>,
    %c6_i32 = arith.constant 6 : i32
    %40 = arith.index_cast %c6_i32 : i32 to index
    %41 = memref.load %arg0[%40] : memref<8xi32, #tpu.memory_space<smem>>
    %42 = arith.index_cast %41 : i32 to index
    %c0_16 = arith.constant 0 : index
    %43 = vector.load %arg1[%42, %c0_16] : memref<64x32xf32, #tpu.memory_space<vmem>>, vector<1x32xf32>
    %44 = arith.index_cast %c6_i32 : i32 to index
    %c0_17 = arith.constant 0 : index
    %45 = vector.load %arg15[%44, %c0_17] : memref<8x32xf32, #tpu.memory_space<vmem>>, vector<1x32xf32>
    tpu.vector_store %arg15[%44, %c0_17], %43 {strides = array<i32>} : memref<8x32xf32, #tpu.memory_space<vmem>>, vector<1x32xf32>,
    %c7_i32 = arith.constant 7 : i32
    %46 = arith.index_cast %c7_i32 : i32 to index
    %47 = memref.load %arg0[%46] : memref<8xi32, #tpu.memory_space<smem>>
    %48 = arith.index_cast %47 : i32 to index
    %c0_18 = arith.constant 0 : index
    %49 = vector.load %arg1[%48, %c0_18] : memref<64x32xf32, #tpu.memory_space<vmem>>, vector<1x32xf32>
    %50 = arith.index_cast %c7_i32 : i32 to index
    %c0_19 = arith.constant 0 : index
    %51 = vector.load %arg15[%50, %c0_19] : memref<8x32xf32, #tpu.memory_space<vmem>>, vector<1x32xf32>
    tpu.vector_store %arg15[%50, %c0_19], %49 {strides = array<i32>} : memref<8x32xf32, #tpu.memory_space<vmem>>, vector<1x32xf32>,
    %c8_i32 = arith.constant 8 : i32
    %c0_20 = arith.constant 0 : index
    %c0_21 = arith.constant 0 : index
    %52 = vector.load %arg15[%c0_20, %c0_21] : memref<8x32xf32, #tpu.memory_space<vmem>>, vector<8x32xf32>
    %c0_22 = arith.constant 0 : index
    %c0_23 = arith.constant 0 : index
    %53 = vector.load %arg2[%c0_22, %c0_23] : memref<32x128xf32, #tpu.memory_space<vmem>>, vector<32x128xf32>
    %cst_24 = arith.constant dense<0.000000e+00> : vector<8x128xf32>
    %54 = tpu.matmul %52, %53, %cst_24 {dimension_numbers = #tpu.dot_dimension_numbers<[1], [0], [0], [1], [0, 0, 1, 1], [], []>} : vector<8x32xf32>, vector<32x128xf32>, vector<8x128xf32> -> vector<8x128xf32>
    %c0_25 = arith.constant 0 : index
    %c0_26 = arith.constant 0 : index
    %55 = vector.load %arg4[%c0_25, %c0_26] : memref<1x128xf32, #tpu.memory_space<vmem>>, vector<1x128xf32>
    %56 = vector.broadcast %55 : vector<1x128xf32> to vector<8x128xf32>
    %57 = arith.addf %54, %56 : vector<8x128xf32>
    %c0_27 = arith.constant 0 : index
    %c0_28 = arith.constant 0 : index
    %58 = vector.load %arg16[%c0_27, %c0_28] : memref<8x128xf32, #tpu.memory_space<vmem>>, vector<8x128xf32>
    tpu.vector_store %arg16[%c0_27, %c0_28], %57 {strides = array<i32>} : memref<8x128xf32, #tpu.memory_space<vmem>>, vector<8x128xf32>,
    %59 = tpu.iota {dimensions = array<i32: 1>} : vector<1x128xi32>
    %c64_i32 = arith.constant 64 : i32
    %60 = vector.broadcast %c64_i32 : i32 to vector<1x128xi32>
    %61 = arith.cmpi sge, %59, %60 : vector<1x128xi32>
    %c96_i32 = arith.constant 96 : i32
    %62 = vector.broadcast %c96_i32 : i32 to vector<1x128xi32>
    %63 = arith.cmpi slt, %59, %62 : vector<1x128xi32>
    %64 = arith.andi %61, %63 : vector<1x128xi1>
    %c0_29 = arith.constant 0 : index
    %c0_30 = arith.constant 0 : index
    %65 = vector.load %arg10[%c0_29, %c0_30] : memref<2x32xf32, #tpu.memory_space<vmem>>, vector<1x32xf32>
    %c0_31 = arith.constant 0 : index
    %c0_32 = arith.constant 0 : index
    %66 = vector.load %arg11[%c0_31, %c0_32] : memref<2x32xf32, #tpu.memory_space<vmem>>, vector<1x32xf32>
    %c1 = arith.constant 1 : index
    %c0_33 = arith.constant 0 : index
    %67 = vector.load %arg10[%c1, %c0_33] : memref<2x32xf32, #tpu.memory_space<vmem>>, vector<1x32xf32>
    %c1_34 = arith.constant 1 : index
    %c0_35 = arith.constant 0 : index
    %68 = vector.load %arg11[%c1_34, %c0_35] : memref<2x32xf32, #tpu.memory_space<vmem>>, vector<1x32xf32>
    %c0_i32_36 = arith.constant 0 : i32
    %69 = arith.index_cast %c0_i32_36 : i32 to index
    %c0_37 = arith.constant 0 : index
    %70 = vector.load %arg16[%69, %c0_37] : memref<8x128xf32, #tpu.memory_space<vmem>>, vector<1x128xf32>
    %c0_38 = arith.constant 0 : index
    %c0_39 = arith.constant 0 : index
    %71 = vector.load %arg3[%c0_38, %c0_39] : memref<32x128xf32, #tpu.memory_space<vmem>>, vector<32x128xf32>
    %cst_40 = arith.constant dense<0.000000e+00> : vector<1x128xf32>
    %72 = tpu.matmul %65, %71, %cst_40 {dimension_numbers = #tpu.dot_dimension_numbers<[1], [0], [0], [1], [0, 0, 1, 1], [], []>} : vector<1x32xf32>, vector<32x128xf32>, vector<1x128xf32> -> vector<1x128xf32>
    %73 = arith.addf %70, %72 : vector<1x128xf32>
    %cst_41 = arith.constant 5.000000e-01 : f32
    %74 = vector.broadcast %cst_41 : f32 to vector<1x128xf32>
    %75 = arith.mulf %74, %73 : vector<1x128xf32>
    %76 = arith.select %64, %73, %75 : vector<1x128xi1>, vector<1x128xf32>
    %77 = math.tanh %76 : vector<1x128xf32>
    %cst_42 = arith.constant 1.000000e+00 : f32
    %78 = vector.broadcast %cst_42 : f32 to vector<1x128xf32>
    %79 = arith.addf %77, %78 : vector<1x128xf32>
    %cst_43 = arith.constant 5.000000e-01 : f32
    %80 = vector.broadcast %cst_43 : f32 to vector<1x128xf32>
    %81 = arith.mulf %80, %79 : vector<1x128xf32>
    %82 = arith.select %64, %77, %81 : vector<1x128xi1>, vector<1x128xf32>
    %83 = vector.extract_strided_slice %82 {offsets = [0, 0], sizes = [1, 32], strides = [1, 1]} : vector<1x128xf32> to vector<1x32xf32>
    %84 = vector.extract_strided_slice %82 {offsets = [0, 32], sizes = [1, 32], strides = [1, 1]} : vector<1x128xf32> to vector<1x32xf32>
    %85 = vector.extract_strided_slice %82 {offsets = [0, 64], sizes = [1, 32], strides = [1, 1]} : vector<1x128xf32> to vector<1x32xf32>
    %86 = vector.extract_strided_slice %82 {offsets = [0, 96], sizes = [1, 32], strides = [1, 1]} : vector<1x128xf32> to vector<1x32xf32>
    %87 = arith.mulf %84, %66 : vector<1x32xf32>
    %88 = arith.mulf %83, %85 : vector<1x32xf32>
    %89 = arith.addf %87, %88 : vector<1x32xf32>
    %90 = math.tanh %89 : vector<1x32xf32>
    %91 = arith.mulf %86, %90 : vector<1x32xf32>
    %c0_44 = arith.constant 0 : index
    %c0_45 = arith.constant 0 : index
    %92 = vector.load %arg5[%c0_44, %c0_45] : memref<32x128xf32, #tpu.memory_space<vmem>>, vector<32x128xf32>
    %cst_46 = arith.constant dense<0.000000e+00> : vector<1x128xf32>
    %93 = tpu.matmul %91, %92, %cst_46 {dimension_numbers = #tpu.dot_dimension_numbers<[1], [0], [0], [1], [0, 0, 1, 1], [], []>} : vector<1x32xf32>, vector<32x128xf32>, vector<1x128xf32> -> vector<1x128xf32>
    %c0_47 = arith.constant 0 : index
    %c0_48 = arith.constant 0 : index
    %94 = vector.load %arg6[%c0_47, %c0_48] : memref<32x128xf32, #tpu.memory_space<vmem>>, vector<32x128xf32>
    %cst_49 = arith.constant dense<0.000000e+00> : vector<1x128xf32>
    %95 = tpu.matmul %67, %94, %cst_49 {dimension_numbers = #tpu.dot_dimension_numbers<[1], [0], [0], [1], [0, 0, 1, 1], [], []>} : vector<1x32xf32>, vector<32x128xf32>, vector<1x128xf32> -> vector<1x128xf32>
    %96 = arith.addf %93, %95 : vector<1x128xf32>
    %c0_50 = arith.constant 0 : index
    %c0_51 = arith.constant 0 : index
    %97 = vector.load %arg7[%c0_50, %c0_51] : memref<1x128xf32, #tpu.memory_space<vmem>>, vector<1x128xf32>
    %98 = arith.addf %96, %97 : vector<1x128xf32>
    %cst_52 = arith.constant 5.000000e-01 : f32
    %99 = vector.broadcast %cst_52 : f32 to vector<1x128xf32>
    %100 = arith.mulf %99, %98 : vector<1x128xf32>
    %101 = arith.select %64, %98, %100 : vector<1x128xi1>, vector<1x128xf32>
    %102 = math.tanh %101 : vector<1x128xf32>
    %cst_53 = arith.constant 1.000000e+00 : f32
    %103 = vector.broadcast %cst_53 : f32 to vector<1x128xf32>
    %104 = arith.addf %102, %103 : vector<1x128xf32>
    %cst_54 = arith.constant 5.000000e-01 : f32
    %105 = vector.broadcast %cst_54 : f32 to vector<1x128xf32>
    %106 = arith.mulf %105, %104 : vector<1x128xf32>
    %107 = arith.select %64, %102, %106 : vector<1x128xi1>, vector<1x128xf32>
    %108 = vector.extract_strided_slice %107 {offsets = [0, 0], sizes = [1, 32], strides = [1, 1]} : vector<1x128xf32> to vector<1x32xf32>
    %109 = vector.extract_strided_slice %107 {offsets = [0, 32], sizes = [1, 32], strides = [1, 1]} : vector<1x128xf32> to vector<1x32xf32>
    %110 = vector.extract_strided_slice %107 {offsets = [0, 64], sizes = [1, 32], strides = [1, 1]} : vector<1x128xf32> to vector<1x32xf32>
    %111 = vector.extract_strided_slice %107 {offsets = [0, 96], sizes = [1, 32], strides = [1, 1]} : vector<1x128xf32> to vector<1x32xf32>
    %112 = arith.mulf %109, %68 : vector<1x32xf32>
    %113 = arith.mulf %108, %110 : vector<1x32xf32>
    %114 = arith.addf %112, %113 : vector<1x32xf32>
    %115 = math.tanh %114 : vector<1x32xf32>
    %116 = arith.mulf %111, %115 : vector<1x32xf32>
    %117 = arith.index_cast %c0_i32_36 : i32 to index
    %c0_55 = arith.constant 0 : index
    %118 = vector.load %arg17[%117, %c0_55] : memref<8x32xf32, #tpu.memory_space<vmem>>, vector<1x32xf32>
    tpu.vector_store %arg17[%117, %c0_55], %116 {strides = array<i32>} : memref<8x32xf32, #tpu.memory_space<vmem>>, vector<1x32xf32>,
    %c1_i32_56 = arith.constant 1 : i32
    %119 = arith.index_cast %c1_i32_56 : i32 to index
    %c0_57 = arith.constant 0 : index
    %120 = vector.load %arg16[%119, %c0_57] : memref<8x128xf32, #tpu.memory_space<vmem>>, vector<1x128xf32>
    %c0_58 = arith.constant 0 : index
    %c0_59 = arith.constant 0 : index
    %121 = vector.load %arg3[%c0_58, %c0_59] : memref<32x128xf32, #tpu.memory_space<vmem>>, vector<32x128xf32>
    %cst_60 = arith.constant dense<0.000000e+00> : vector<1x128xf32>
    %122 = tpu.matmul %91, %121, %cst_60 {dimension_numbers = #tpu.dot_dimension_numbers<[1], [0], [0], [1], [0, 0, 1, 1], [], []>} : vector<1x32xf32>, vector<32x128xf32>, vector<1x128xf32> -> vector<1x128xf32>
    %123 = arith.addf %120, %122 : vector<1x128xf32>
    %cst_61 = arith.constant 5.000000e-01 : f32
    %124 = vector.broadcast %cst_61 : f32 to vector<1x128xf32>
    %125 = arith.mulf %124, %123 : vector<1x128xf32>
    %126 = arith.select %64, %123, %125 : vector<1x128xi1>, vector<1x128xf32>
    %127 = math.tanh %126 : vector<1x128xf32>
    %cst_62 = arith.constant 1.000000e+00 : f32
    %128 = vector.broadcast %cst_62 : f32 to vector<1x128xf32>
    %129 = arith.addf %127, %128 : vector<1x128xf32>
    %cst_63 = arith.constant 5.000000e-01 : f32
    %130 = vector.broadcast %cst_63 : f32 to vector<1x128xf32>
    %131 = arith.mulf %130, %129 : vector<1x128xf32>
    %132 = arith.select %64, %127, %131 : vector<1x128xi1>, vector<1x128xf32>
    %133 = vector.extract_strided_slice %132 {offsets = [0, 0], sizes = [1, 32], strides = [1, 1]} : vector<1x128xf32> to vector<1x32xf32>
    %134 = vector.extract_strided_slice %132 {offsets = [0, 32], sizes = [1, 32], strides = [1, 1]} : vector<1x128xf32> to vector<1x32xf32>
    %135 = vector.extract_strided_slice %132 {offsets = [0, 64], sizes = [1, 32], strides = [1, 1]} : vector<1x128xf32> to vector<1x32xf32>
    %136 = vector.extract_strided_slice %132 {offsets = [0, 96], sizes = [1, 32], strides = [1, 1]} : vector<1x128xf32> to vector<1x32xf32>
    %137 = arith.mulf %134, %89 : vector<1x32xf32>
    %138 = arith.mulf %133, %135 : vector<1x32xf32>
    %139 = arith.addf %137, %138 : vector<1x32xf32>
    %140 = math.tanh %139 : vector<1x32xf32>
    %141 = arith.mulf %136, %140 : vector<1x32xf32>
    %c0_64 = arith.constant 0 : index
    %c0_65 = arith.constant 0 : index
    %142 = vector.load %arg5[%c0_64, %c0_65] : memref<32x128xf32, #tpu.memory_space<vmem>>, vector<32x128xf32>
    %cst_66 = arith.constant dense<0.000000e+00> : vector<1x128xf32>
    %143 = tpu.matmul %141, %142, %cst_66 {dimension_numbers = #tpu.dot_dimension_numbers<[1], [0], [0], [1], [0, 0, 1, 1], [], []>} : vector<1x32xf32>, vector<32x128xf32>, vector<1x128xf32> -> vector<1x128xf32>
    %c0_67 = arith.constant 0 : index
    %c0_68 = arith.constant 0 : index
    %144 = vector.load %arg6[%c0_67, %c0_68] : memref<32x128xf32, #tpu.memory_space<vmem>>, vector<32x128xf32>
    %cst_69 = arith.constant dense<0.000000e+00> : vector<1x128xf32>
    %145 = tpu.matmul %116, %144, %cst_69 {dimension_numbers = #tpu.dot_dimension_numbers<[1], [0], [0], [1], [0, 0, 1, 1], [], []>} : vector<1x32xf32>, vector<32x128xf32>, vector<1x128xf32> -> vector<1x128xf32>
    %146 = arith.addf %143, %145 : vector<1x128xf32>
    %c0_70 = arith.constant 0 : index
    %c0_71 = arith.constant 0 : index
    %147 = vector.load %arg7[%c0_70, %c0_71] : memref<1x128xf32, #tpu.memory_space<vmem>>, vector<1x128xf32>
    %148 = arith.addf %146, %147 : vector<1x128xf32>
    %cst_72 = arith.constant 5.000000e-01 : f32
    %149 = vector.broadcast %cst_72 : f32 to vector<1x128xf32>
    %150 = arith.mulf %149, %148 : vector<1x128xf32>
    %151 = arith.select %64, %148, %150 : vector<1x128xi1>, vector<1x128xf32>
    %152 = math.tanh %151 : vector<1x128xf32>
    %cst_73 = arith.constant 1.000000e+00 : f32
    %153 = vector.broadcast %cst_73 : f32 to vector<1x128xf32>
    %154 = arith.addf %152, %153 : vector<1x128xf32>
    %cst_74 = arith.constant 5.000000e-01 : f32
    %155 = vector.broadcast %cst_74 : f32 to vector<1x128xf32>
    %156 = arith.mulf %155, %154 : vector<1x128xf32>
    %157 = arith.select %64, %152, %156 : vector<1x128xi1>, vector<1x128xf32>
    %158 = vector.extract_strided_slice %157 {offsets = [0, 0], sizes = [1, 32], strides = [1, 1]} : vector<1x128xf32> to vector<1x32xf32>
    %159 = vector.extract_strided_slice %157 {offsets = [0, 32], sizes = [1, 32], strides = [1, 1]} : vector<1x128xf32> to vector<1x32xf32>
    %160 = vector.extract_strided_slice %157 {offsets = [0, 64], sizes = [1, 32], strides = [1, 1]} : vector<1x128xf32> to vector<1x32xf32>
    %161 = vector.extract_strided_slice %157 {offsets = [0, 96], sizes = [1, 32], strides = [1, 1]} : vector<1x128xf32> to vector<1x32xf32>
    %162 = arith.mulf %159, %114 : vector<1x32xf32>
    %163 = arith.mulf %158, %160 : vector<1x32xf32>
    %164 = arith.addf %162, %163 : vector<1x32xf32>
    %165 = math.tanh %164 : vector<1x32xf32>
    %166 = arith.mulf %161, %165 : vector<1x32xf32>
    %167 = arith.index_cast %c1_i32_56 : i32 to index
    %c0_75 = arith.constant 0 : index
    %168 = vector.load %arg17[%167, %c0_75] : memref<8x32xf32, #tpu.memory_space<vmem>>, vector<1x32xf32>
    tpu.vector_store %arg17[%167, %c0_75], %166 {strides = array<i32>} : memref<8x32xf32, #tpu.memory_space<vmem>>, vector<1x32xf32>,
    %c2_i32_76 = arith.constant 2 : i32
    %169 = arith.index_cast %c2_i32_76 : i32 to index
    %c0_77 = arith.constant 0 : index
    %170 = vector.load %arg16[%169, %c0_77] : memref<8x128xf32, #tpu.memory_space<vmem>>, vector<1x128xf32>
    %c0_78 = arith.constant 0 : index
    %c0_79 = arith.constant 0 : index
    %171 = vector.load %arg3[%c0_78, %c0_79] : memref<32x128xf32, #tpu.memory_space<vmem>>, vector<32x128xf32>
    %cst_80 = arith.constant dense<0.000000e+00> : vector<1x128xf32>
    %172 = tpu.matmul %141, %171, %cst_80 {dimension_numbers = #tpu.dot_dimension_numbers<[1], [0], [0], [1], [0, 0, 1, 1], [], []>} : vector<1x32xf32>, vector<32x128xf32>, vector<1x128xf32> -> vector<1x128xf32>
    %173 = arith.addf %170, %172 : vector<1x128xf32>
    %cst_81 = arith.constant 5.000000e-01 : f32
    %174 = vector.broadcast %cst_81 : f32 to vector<1x128xf32>
    %175 = arith.mulf %174, %173 : vector<1x128xf32>
    %176 = arith.select %64, %173, %175 : vector<1x128xi1>, vector<1x128xf32>
    %177 = math.tanh %176 : vector<1x128xf32>
    %cst_82 = arith.constant 1.000000e+00 : f32
    %178 = vector.broadcast %cst_82 : f32 to vector<1x128xf32>
    %179 = arith.addf %177, %178 : vector<1x128xf32>
    %cst_83 = arith.constant 5.000000e-01 : f32
    %180 = vector.broadcast %cst_83 : f32 to vector<1x128xf32>
    %181 = arith.mulf %180, %179 : vector<1x128xf32>
    %182 = arith.select %64, %177, %181 : vector<1x128xi1>, vector<1x128xf32>
    %183 = vector.extract_strided_slice %182 {offsets = [0, 0], sizes = [1, 32], strides = [1, 1]} : vector<1x128xf32> to vector<1x32xf32>
    %184 = vector.extract_strided_slice %182 {offsets = [0, 32], sizes = [1, 32], strides = [1, 1]} : vector<1x128xf32> to vector<1x32xf32>
    %185 = vector.extract_strided_slice %182 {offsets = [0, 64], sizes = [1, 32], strides = [1, 1]} : vector<1x128xf32> to vector<1x32xf32>
    %186 = vector.extract_strided_slice %182 {offsets = [0, 96], sizes = [1, 32], strides = [1, 1]} : vector<1x128xf32> to vector<1x32xf32>
    %187 = arith.mulf %184, %139 : vector<1x32xf32>
    %188 = arith.mulf %183, %185 : vector<1x32xf32>
    %189 = arith.addf %187, %188 : vector<1x32xf32>
    %190 = math.tanh %189 : vector<1x32xf32>
    %191 = arith.mulf %186, %190 : vector<1x32xf32>
    %c0_84 = arith.constant 0 : index
    %c0_85 = arith.constant 0 : index
    %192 = vector.load %arg5[%c0_84, %c0_85] : memref<32x128xf32, #tpu.memory_space<vmem>>, vector<32x128xf32>
    %cst_86 = arith.constant dense<0.000000e+00> : vector<1x128xf32>
    %193 = tpu.matmul %191, %192, %cst_86 {dimension_numbers = #tpu.dot_dimension_numbers<[1], [0], [0], [1], [0, 0, 1, 1], [], []>} : vector<1x32xf32>, vector<32x128xf32>, vector<1x128xf32> -> vector<1x128xf32>
    %c0_87 = arith.constant 0 : index
    %c0_88 = arith.constant 0 : index
    %194 = vector.load %arg6[%c0_87, %c0_88] : memref<32x128xf32, #tpu.memory_space<vmem>>, vector<32x128xf32>
    %cst_89 = arith.constant dense<0.000000e+00> : vector<1x128xf32>
    %195 = tpu.matmul %166, %194, %cst_89 {dimension_numbers = #tpu.dot_dimension_numbers<[1], [0], [0], [1], [0, 0, 1, 1], [], []>} : vector<1x32xf32>, vector<32x128xf32>, vector<1x128xf32> -> vector<1x128xf32>
    %196 = arith.addf %193, %195 : vector<1x128xf32>
    %c0_90 = arith.constant 0 : index
    %c0_91 = arith.constant 0 : index
    %197 = vector.load %arg7[%c0_90, %c0_91] : memref<1x128xf32, #tpu.memory_space<vmem>>, vector<1x128xf32>
    %198 = arith.addf %196, %197 : vector<1x128xf32>
    %cst_92 = arith.constant 5.000000e-01 : f32
    %199 = vector.broadcast %cst_92 : f32 to vector<1x128xf32>
    %200 = arith.mulf %199, %198 : vector<1x128xf32>
    %201 = arith.select %64, %198, %200 : vector<1x128xi1>, vector<1x128xf32>
    %202 = math.tanh %201 : vector<1x128xf32>
    %cst_93 = arith.constant 1.000000e+00 : f32
    %203 = vector.broadcast %cst_93 : f32 to vector<1x128xf32>
    %204 = arith.addf %202, %203 : vector<1x128xf32>
    %cst_94 = arith.constant 5.000000e-01 : f32
    %205 = vector.broadcast %cst_94 : f32 to vector<1x128xf32>
    %206 = arith.mulf %205, %204 : vector<1x128xf32>
    %207 = arith.select %64, %202, %206 : vector<1x128xi1>, vector<1x128xf32>
    %208 = vector.extract_strided_slice %207 {offsets = [0, 0], sizes = [1, 32], strides = [1, 1]} : vector<1x128xf32> to vector<1x32xf32>
    %209 = vector.extract_strided_slice %207 {offsets = [0, 32], sizes = [1, 32], strides = [1, 1]} : vector<1x128xf32> to vector<1x32xf32>
    %210 = vector.extract_strided_slice %207 {offsets = [0, 64], sizes = [1, 32], strides = [1, 1]} : vector<1x128xf32> to vector<1x32xf32>
    %211 = vector.extract_strided_slice %207 {offsets = [0, 96], sizes = [1, 32], strides = [1, 1]} : vector<1x128xf32> to vector<1x32xf32>
    %212 = arith.mulf %209, %164 : vector<1x32xf32>
    %213 = arith.mulf %208, %210 : vector<1x32xf32>
    %214 = arith.addf %212, %213 : vector<1x32xf32>
    %215 = math.tanh %214 : vector<1x32xf32>
    %216 = arith.mulf %211, %215 : vector<1x32xf32>
    %217 = arith.index_cast %c2_i32_76 : i32 to index
    %c0_95 = arith.constant 0 : index
    %218 = vector.load %arg17[%217, %c0_95] : memref<8x32xf32, #tpu.memory_space<vmem>>, vector<1x32xf32>
    tpu.vector_store %arg17[%217, %c0_95], %216 {strides = array<i32>} : memref<8x32xf32, #tpu.memory_space<vmem>>, vector<1x32xf32>,
    %c3_i32_96 = arith.constant 3 : i32
    %219 = arith.index_cast %c3_i32_96 : i32 to index
    %c0_97 = arith.constant 0 : index
    %220 = vector.load %arg16[%219, %c0_97] : memref<8x128xf32, #tpu.memory_space<vmem>>, vector<1x128xf32>
    %c0_98 = arith.constant 0 : index
    %c0_99 = arith.constant 0 : index
    %221 = vector.load %arg3[%c0_98, %c0_99] : memref<32x128xf32, #tpu.memory_space<vmem>>, vector<32x128xf32>
    %cst_100 = arith.constant dense<0.000000e+00> : vector<1x128xf32>
    %222 = tpu.matmul %191, %221, %cst_100 {dimension_numbers = #tpu.dot_dimension_numbers<[1], [0], [0], [1], [0, 0, 1, 1], [], []>} : vector<1x32xf32>, vector<32x128xf32>, vector<1x128xf32> -> vector<1x128xf32>
    %223 = arith.addf %220, %222 : vector<1x128xf32>
    %cst_101 = arith.constant 5.000000e-01 : f32
    %224 = vector.broadcast %cst_101 : f32 to vector<1x128xf32>
    %225 = arith.mulf %224, %223 : vector<1x128xf32>
    %226 = arith.select %64, %223, %225 : vector<1x128xi1>, vector<1x128xf32>
    %227 = math.tanh %226 : vector<1x128xf32>
    %cst_102 = arith.constant 1.000000e+00 : f32
    %228 = vector.broadcast %cst_102 : f32 to vector<1x128xf32>
    %229 = arith.addf %227, %228 : vector<1x128xf32>
    %cst_103 = arith.constant 5.000000e-01 : f32
    %230 = vector.broadcast %cst_103 : f32 to vector<1x128xf32>
    %231 = arith.mulf %230, %229 : vector<1x128xf32>
    %232 = arith.select %64, %227, %231 : vector<1x128xi1>, vector<1x128xf32>
    %233 = vector.extract_strided_slice %232 {offsets = [0, 0], sizes = [1, 32], strides = [1, 1]} : vector<1x128xf32> to vector<1x32xf32>
    %234 = vector.extract_strided_slice %232 {offsets = [0, 32], sizes = [1, 32], strides = [1, 1]} : vector<1x128xf32> to vector<1x32xf32>
    %235 = vector.extract_strided_slice %232 {offsets = [0, 64], sizes = [1, 32], strides = [1, 1]} : vector<1x128xf32> to vector<1x32xf32>
    %236 = vector.extract_strided_slice %232 {offsets = [0, 96], sizes = [1, 32], strides = [1, 1]} : vector<1x128xf32> to vector<1x32xf32>
    %237 = arith.mulf %234, %189 : vector<1x32xf32>
    %238 = arith.mulf %233, %235 : vector<1x32xf32>
    %239 = arith.addf %237, %238 : vector<1x32xf32>
    %240 = math.tanh %239 : vector<1x32xf32>
    %241 = arith.mulf %236, %240 : vector<1x32xf32>
    %c0_104 = arith.constant 0 : index
    %c0_105 = arith.constant 0 : index
    %242 = vector.load %arg5[%c0_104, %c0_105] : memref<32x128xf32, #tpu.memory_space<vmem>>, vector<32x128xf32>
    %cst_106 = arith.constant dense<0.000000e+00> : vector<1x128xf32>
    %243 = tpu.matmul %241, %242, %cst_106 {dimension_numbers = #tpu.dot_dimension_numbers<[1], [0], [0], [1], [0, 0, 1, 1], [], []>} : vector<1x32xf32>, vector<32x128xf32>, vector<1x128xf32> -> vector<1x128xf32>
    %c0_107 = arith.constant 0 : index
    %c0_108 = arith.constant 0 : index
    %244 = vector.load %arg6[%c0_107, %c0_108] : memref<32x128xf32, #tpu.memory_space<vmem>>, vector<32x128xf32>
    %cst_109 = arith.constant dense<0.000000e+00> : vector<1x128xf32>
    %245 = tpu.matmul %216, %244, %cst_109 {dimension_numbers = #tpu.dot_dimension_numbers<[1], [0], [0], [1], [0, 0, 1, 1], [], []>} : vector<1x32xf32>, vector<32x128xf32>, vector<1x128xf32> -> vector<1x128xf32>
    %246 = arith.addf %243, %245 : vector<1x128xf32>
    %c0_110 = arith.constant 0 : index
    %c0_111 = arith.constant 0 : index
    %247 = vector.load %arg7[%c0_110, %c0_111] : memref<1x128xf32, #tpu.memory_space<vmem>>, vector<1x128xf32>
    %248 = arith.addf %246, %247 : vector<1x128xf32>
    %cst_112 = arith.constant 5.000000e-01 : f32
    %249 = vector.broadcast %cst_112 : f32 to vector<1x128xf32>
    %250 = arith.mulf %249, %248 : vector<1x128xf32>
    %251 = arith.select %64, %248, %250 : vector<1x128xi1>, vector<1x128xf32>
    %252 = math.tanh %251 : vector<1x128xf32>
    %cst_113 = arith.constant 1.000000e+00 : f32
    %253 = vector.broadcast %cst_113 : f32 to vector<1x128xf32>
    %254 = arith.addf %252, %253 : vector<1x128xf32>
    %cst_114 = arith.constant 5.000000e-01 : f32
    %255 = vector.broadcast %cst_114 : f32 to vector<1x128xf32>
    %256 = arith.mulf %255, %254 : vector<1x128xf32>
    %257 = arith.select %64, %252, %256 : vector<1x128xi1>, vector<1x128xf32>
    %258 = vector.extract_strided_slice %257 {offsets = [0, 0], sizes = [1, 32], strides = [1, 1]} : vector<1x128xf32> to vector<1x32xf32>
    %259 = vector.extract_strided_slice %257 {offsets = [0, 32], sizes = [1, 32], strides = [1, 1]} : vector<1x128xf32> to vector<1x32xf32>
    %260 = vector.extract_strided_slice %257 {offsets = [0, 64], sizes = [1, 32], strides = [1, 1]} : vector<1x128xf32> to vector<1x32xf32>
    %261 = vector.extract_strided_slice %257 {offsets = [0, 96], sizes = [1, 32], strides = [1, 1]} : vector<1x128xf32> to vector<1x32xf32>
    %262 = arith.mulf %259, %214 : vector<1x32xf32>
    %263 = arith.mulf %258, %260 : vector<1x32xf32>
    %264 = arith.addf %262, %263 : vector<1x32xf32>
    %265 = math.tanh %264 : vector<1x32xf32>
    %266 = arith.mulf %261, %265 : vector<1x32xf32>
    %267 = arith.index_cast %c3_i32_96 : i32 to index
    %c0_115 = arith.constant 0 : index
    %268 = vector.load %arg17[%267, %c0_115] : memref<8x32xf32, #tpu.memory_space<vmem>>, vector<1x32xf32>
    tpu.vector_store %arg17[%267, %c0_115], %266 {strides = array<i32>} : memref<8x32xf32, #tpu.memory_space<vmem>>, vector<1x32xf32>,
    %c4_i32_116 = arith.constant 4 : i32
    %269 = arith.index_cast %c4_i32_116 : i32 to index
    %c0_117 = arith.constant 0 : index
    %270 = vector.load %arg16[%269, %c0_117] : memref<8x128xf32, #tpu.memory_space<vmem>>, vector<1x128xf32>
    %c0_118 = arith.constant 0 : index
    %c0_119 = arith.constant 0 : index
    %271 = vector.load %arg3[%c0_118, %c0_119] : memref<32x128xf32, #tpu.memory_space<vmem>>, vector<32x128xf32>
    %cst_120 = arith.constant dense<0.000000e+00> : vector<1x128xf32>
    %272 = tpu.matmul %241, %271, %cst_120 {dimension_numbers = #tpu.dot_dimension_numbers<[1], [0], [0], [1], [0, 0, 1, 1], [], []>} : vector<1x32xf32>, vector<32x128xf32>, vector<1x128xf32> -> vector<1x128xf32>
    %273 = arith.addf %270, %272 : vector<1x128xf32>
    %cst_121 = arith.constant 5.000000e-01 : f32
    %274 = vector.broadcast %cst_121 : f32 to vector<1x128xf32>
    %275 = arith.mulf %274, %273 : vector<1x128xf32>
    %276 = arith.select %64, %273, %275 : vector<1x128xi1>, vector<1x128xf32>
    %277 = math.tanh %276 : vector<1x128xf32>
    %cst_122 = arith.constant 1.000000e+00 : f32
    %278 = vector.broadcast %cst_122 : f32 to vector<1x128xf32>
    %279 = arith.addf %277, %278 : vector<1x128xf32>
    %cst_123 = arith.constant 5.000000e-01 : f32
    %280 = vector.broadcast %cst_123 : f32 to vector<1x128xf32>
    %281 = arith.mulf %280, %279 : vector<1x128xf32>
    %282 = arith.select %64, %277, %281 : vector<1x128xi1>, vector<1x128xf32>
    %283 = vector.extract_strided_slice %282 {offsets = [0, 0], sizes = [1, 32], strides = [1, 1]} : vector<1x128xf32> to vector<1x32xf32>
    %284 = vector.extract_strided_slice %282 {offsets = [0, 32], sizes = [1, 32], strides = [1, 1]} : vector<1x128xf32> to vector<1x32xf32>
    %285 = vector.extract_strided_slice %282 {offsets = [0, 64], sizes = [1, 32], strides = [1, 1]} : vector<1x128xf32> to vector<1x32xf32>
    %286 = vector.extract_strided_slice %282 {offsets = [0, 96], sizes = [1, 32], strides = [1, 1]} : vector<1x128xf32> to vector<1x32xf32>
    %287 = arith.mulf %284, %239 : vector<1x32xf32>
    %288 = arith.mulf %283, %285 : vector<1x32xf32>
    %289 = arith.addf %287, %288 : vector<1x32xf32>
    %290 = math.tanh %289 : vector<1x32xf32>
    %291 = arith.mulf %286, %290 : vector<1x32xf32>
    %c0_124 = arith.constant 0 : index
    %c0_125 = arith.constant 0 : index
    %292 = vector.load %arg5[%c0_124, %c0_125] : memref<32x128xf32, #tpu.memory_space<vmem>>, vector<32x128xf32>
    %cst_126 = arith.constant dense<0.000000e+00> : vector<1x128xf32>
    %293 = tpu.matmul %291, %292, %cst_126 {dimension_numbers = #tpu.dot_dimension_numbers<[1], [0], [0], [1], [0, 0, 1, 1], [], []>} : vector<1x32xf32>, vector<32x128xf32>, vector<1x128xf32> -> vector<1x128xf32>
    %c0_127 = arith.constant 0 : index
    %c0_128 = arith.constant 0 : index
    %294 = vector.load %arg6[%c0_127, %c0_128] : memref<32x128xf32, #tpu.memory_space<vmem>>, vector<32x128xf32>
    %cst_129 = arith.constant dense<0.000000e+00> : vector<1x128xf32>
    %295 = tpu.matmul %266, %294, %cst_129 {dimension_numbers = #tpu.dot_dimension_numbers<[1], [0], [0], [1], [0, 0, 1, 1], [], []>} : vector<1x32xf32>, vector<32x128xf32>, vector<1x128xf32> -> vector<1x128xf32>
    %296 = arith.addf %293, %295 : vector<1x128xf32>
    %c0_130 = arith.constant 0 : index
    %c0_131 = arith.constant 0 : index
    %297 = vector.load %arg7[%c0_130, %c0_131] : memref<1x128xf32, #tpu.memory_space<vmem>>, vector<1x128xf32>
    %298 = arith.addf %296, %297 : vector<1x128xf32>
    %cst_132 = arith.constant 5.000000e-01 : f32
    %299 = vector.broadcast %cst_132 : f32 to vector<1x128xf32>
    %300 = arith.mulf %299, %298 : vector<1x128xf32>
    %301 = arith.select %64, %298, %300 : vector<1x128xi1>, vector<1x128xf32>
    %302 = math.tanh %301 : vector<1x128xf32>
    %cst_133 = arith.constant 1.000000e+00 : f32
    %303 = vector.broadcast %cst_133 : f32 to vector<1x128xf32>
    %304 = arith.addf %302, %303 : vector<1x128xf32>
    %cst_134 = arith.constant 5.000000e-01 : f32
    %305 = vector.broadcast %cst_134 : f32 to vector<1x128xf32>
    %306 = arith.mulf %305, %304 : vector<1x128xf32>
    %307 = arith.select %64, %302, %306 : vector<1x128xi1>, vector<1x128xf32>
    %308 = vector.extract_strided_slice %307 {offsets = [0, 0], sizes = [1, 32], strides = [1, 1]} : vector<1x128xf32> to vector<1x32xf32>
    %309 = vector.extract_strided_slice %307 {offsets = [0, 32], sizes = [1, 32], strides = [1, 1]} : vector<1x128xf32> to vector<1x32xf32>
    %310 = vector.extract_strided_slice %307 {offsets = [0, 64], sizes = [1, 32], strides = [1, 1]} : vector<1x128xf32> to vector<1x32xf32>
    %311 = vector.extract_strided_slice %307 {offsets = [0, 96], sizes = [1, 32], strides = [1, 1]} : vector<1x128xf32> to vector<1x32xf32>
    %312 = arith.mulf %309, %264 : vector<1x32xf32>
    %313 = arith.mulf %308, %310 : vector<1x32xf32>
    %314 = arith.addf %312, %313 : vector<1x32xf32>
    %315 = math.tanh %314 : vector<1x32xf32>
    %316 = arith.mulf %311, %315 : vector<1x32xf32>
    %317 = arith.index_cast %c4_i32_116 : i32 to index
    %c0_135 = arith.constant 0 : index
    %318 = vector.load %arg17[%317, %c0_135] : memref<8x32xf32, #tpu.memory_space<vmem>>, vector<1x32xf32>
    tpu.vector_store %arg17[%317, %c0_135], %316 {strides = array<i32>} : memref<8x32xf32, #tpu.memory_space<vmem>>, vector<1x32xf32>,
    %c5_i32_136 = arith.constant 5 : i32
    %319 = arith.index_cast %c5_i32_136 : i32 to index
    %c0_137 = arith.constant 0 : index
    %320 = vector.load %arg16[%319, %c0_137] : memref<8x128xf32, #tpu.memory_space<vmem>>, vector<1x128xf32>
    %c0_138 = arith.constant 0 : index
    %c0_139 = arith.constant 0 : index
    %321 = vector.load %arg3[%c0_138, %c0_139] : memref<32x128xf32, #tpu.memory_space<vmem>>, vector<32x128xf32>
    %cst_140 = arith.constant dense<0.000000e+00> : vector<1x128xf32>
    %322 = tpu.matmul %291, %321, %cst_140 {dimension_numbers = #tpu.dot_dimension_numbers<[1], [0], [0], [1], [0, 0, 1, 1], [], []>} : vector<1x32xf32>, vector<32x128xf32>, vector<1x128xf32> -> vector<1x128xf32>
    %323 = arith.addf %320, %322 : vector<1x128xf32>
    %cst_141 = arith.constant 5.000000e-01 : f32
    %324 = vector.broadcast %cst_141 : f32 to vector<1x128xf32>
    %325 = arith.mulf %324, %323 : vector<1x128xf32>
    %326 = arith.select %64, %323, %325 : vector<1x128xi1>, vector<1x128xf32>
    %327 = math.tanh %326 : vector<1x128xf32>
    %cst_142 = arith.constant 1.000000e+00 : f32
    %328 = vector.broadcast %cst_142 : f32 to vector<1x128xf32>
    %329 = arith.addf %327, %328 : vector<1x128xf32>
    %cst_143 = arith.constant 5.000000e-01 : f32
    %330 = vector.broadcast %cst_143 : f32 to vector<1x128xf32>
    %331 = arith.mulf %330, %329 : vector<1x128xf32>
    %332 = arith.select %64, %327, %331 : vector<1x128xi1>, vector<1x128xf32>
    %333 = vector.extract_strided_slice %332 {offsets = [0, 0], sizes = [1, 32], strides = [1, 1]} : vector<1x128xf32> to vector<1x32xf32>
    %334 = vector.extract_strided_slice %332 {offsets = [0, 32], sizes = [1, 32], strides = [1, 1]} : vector<1x128xf32> to vector<1x32xf32>
    %335 = vector.extract_strided_slice %332 {offsets = [0, 64], sizes = [1, 32], strides = [1, 1]} : vector<1x128xf32> to vector<1x32xf32>
    %336 = vector.extract_strided_slice %332 {offsets = [0, 96], sizes = [1, 32], strides = [1, 1]} : vector<1x128xf32> to vector<1x32xf32>
    %337 = arith.mulf %334, %289 : vector<1x32xf32>
    %338 = arith.mulf %333, %335 : vector<1x32xf32>
    %339 = arith.addf %337, %338 : vector<1x32xf32>
    %340 = math.tanh %339 : vector<1x32xf32>
    %341 = arith.mulf %336, %340 : vector<1x32xf32>
    %c0_144 = arith.constant 0 : index
    %c0_145 = arith.constant 0 : index
    %342 = vector.load %arg5[%c0_144, %c0_145] : memref<32x128xf32, #tpu.memory_space<vmem>>, vector<32x128xf32>
    %cst_146 = arith.constant dense<0.000000e+00> : vector<1x128xf32>
    %343 = tpu.matmul %341, %342, %cst_146 {dimension_numbers = #tpu.dot_dimension_numbers<[1], [0], [0], [1], [0, 0, 1, 1], [], []>} : vector<1x32xf32>, vector<32x128xf32>, vector<1x128xf32> -> vector<1x128xf32>
    %c0_147 = arith.constant 0 : index
    %c0_148 = arith.constant 0 : index
    %344 = vector.load %arg6[%c0_147, %c0_148] : memref<32x128xf32, #tpu.memory_space<vmem>>, vector<32x128xf32>
    %cst_149 = arith.constant dense<0.000000e+00> : vector<1x128xf32>
    %345 = tpu.matmul %316, %344, %cst_149 {dimension_numbers = #tpu.dot_dimension_numbers<[1], [0], [0], [1], [0, 0, 1, 1], [], []>} : vector<1x32xf32>, vector<32x128xf32>, vector<1x128xf32> -> vector<1x128xf32>
    %346 = arith.addf %343, %345 : vector<1x128xf32>
    %c0_150 = arith.constant 0 : index
    %c0_151 = arith.constant 0 : index
    %347 = vector.load %arg7[%c0_150, %c0_151] : memref<1x128xf32, #tpu.memory_space<vmem>>, vector<1x128xf32>
    %348 = arith.addf %346, %347 : vector<1x128xf32>
    %cst_152 = arith.constant 5.000000e-01 : f32
    %349 = vector.broadcast %cst_152 : f32 to vector<1x128xf32>
    %350 = arith.mulf %349, %348 : vector<1x128xf32>
    %351 = arith.select %64, %348, %350 : vector<1x128xi1>, vector<1x128xf32>
    %352 = math.tanh %351 : vector<1x128xf32>
    %cst_153 = arith.constant 1.000000e+00 : f32
    %353 = vector.broadcast %cst_153 : f32 to vector<1x128xf32>
    %354 = arith.addf %352, %353 : vector<1x128xf32>
    %cst_154 = arith.constant 5.000000e-01 : f32
    %355 = vector.broadcast %cst_154 : f32 to vector<1x128xf32>
    %356 = arith.mulf %355, %354 : vector<1x128xf32>
    %357 = arith.select %64, %352, %356 : vector<1x128xi1>, vector<1x128xf32>
    %358 = vector.extract_strided_slice %357 {offsets = [0, 0], sizes = [1, 32], strides = [1, 1]} : vector<1x128xf32> to vector<1x32xf32>
    %359 = vector.extract_strided_slice %357 {offsets = [0, 32], sizes = [1, 32], strides = [1, 1]} : vector<1x128xf32> to vector<1x32xf32>
    %360 = vector.extract_strided_slice %357 {offsets = [0, 64], sizes = [1, 32], strides = [1, 1]} : vector<1x128xf32> to vector<1x32xf32>
    %361 = vector.extract_strided_slice %357 {offsets = [0, 96], sizes = [1, 32], strides = [1, 1]} : vector<1x128xf32> to vector<1x32xf32>
    %362 = arith.mulf %359, %314 : vector<1x32xf32>
    %363 = arith.mulf %358, %360 : vector<1x32xf32>
    %364 = arith.addf %362, %363 : vector<1x32xf32>
    %365 = math.tanh %364 : vector<1x32xf32>
    %366 = arith.mulf %361, %365 : vector<1x32xf32>
    %367 = arith.index_cast %c5_i32_136 : i32 to index
    %c0_155 = arith.constant 0 : index
    %368 = vector.load %arg17[%367, %c0_155] : memref<8x32xf32, #tpu.memory_space<vmem>>, vector<1x32xf32>
    tpu.vector_store %arg17[%367, %c0_155], %366 {strides = array<i32>} : memref<8x32xf32, #tpu.memory_space<vmem>>, vector<1x32xf32>,
    %c6_i32_156 = arith.constant 6 : i32
    %369 = arith.index_cast %c6_i32_156 : i32 to index
    %c0_157 = arith.constant 0 : index
    %370 = vector.load %arg16[%369, %c0_157] : memref<8x128xf32, #tpu.memory_space<vmem>>, vector<1x128xf32>
    %c0_158 = arith.constant 0 : index
    %c0_159 = arith.constant 0 : index
    %371 = vector.load %arg3[%c0_158, %c0_159] : memref<32x128xf32, #tpu.memory_space<vmem>>, vector<32x128xf32>
    %cst_160 = arith.constant dense<0.000000e+00> : vector<1x128xf32>
    %372 = tpu.matmul %341, %371, %cst_160 {dimension_numbers = #tpu.dot_dimension_numbers<[1], [0], [0], [1], [0, 0, 1, 1], [], []>} : vector<1x32xf32>, vector<32x128xf32>, vector<1x128xf32> -> vector<1x128xf32>
    %373 = arith.addf %370, %372 : vector<1x128xf32>
    %cst_161 = arith.constant 5.000000e-01 : f32
    %374 = vector.broadcast %cst_161 : f32 to vector<1x128xf32>
    %375 = arith.mulf %374, %373 : vector<1x128xf32>
    %376 = arith.select %64, %373, %375 : vector<1x128xi1>, vector<1x128xf32>
    %377 = math.tanh %376 : vector<1x128xf32>
    %cst_162 = arith.constant 1.000000e+00 : f32
    %378 = vector.broadcast %cst_162 : f32 to vector<1x128xf32>
    %379 = arith.addf %377, %378 : vector<1x128xf32>
    %cst_163 = arith.constant 5.000000e-01 : f32
    %380 = vector.broadcast %cst_163 : f32 to vector<1x128xf32>
    %381 = arith.mulf %380, %379 : vector<1x128xf32>
    %382 = arith.select %64, %377, %381 : vector<1x128xi1>, vector<1x128xf32>
    %383 = vector.extract_strided_slice %382 {offsets = [0, 0], sizes = [1, 32], strides = [1, 1]} : vector<1x128xf32> to vector<1x32xf32>
    %384 = vector.extract_strided_slice %382 {offsets = [0, 32], sizes = [1, 32], strides = [1, 1]} : vector<1x128xf32> to vector<1x32xf32>
    %385 = vector.extract_strided_slice %382 {offsets = [0, 64], sizes = [1, 32], strides = [1, 1]} : vector<1x128xf32> to vector<1x32xf32>
    %386 = vector.extract_strided_slice %382 {offsets = [0, 96], sizes = [1, 32], strides = [1, 1]} : vector<1x128xf32> to vector<1x32xf32>
    %387 = arith.mulf %384, %339 : vector<1x32xf32>
    %388 = arith.mulf %383, %385 : vector<1x32xf32>
    %389 = arith.addf %387, %388 : vector<1x32xf32>
    %390 = math.tanh %389 : vector<1x32xf32>
    %391 = arith.mulf %386, %390 : vector<1x32xf32>
    %c0_164 = arith.constant 0 : index
    %c0_165 = arith.constant 0 : index
    %392 = vector.load %arg5[%c0_164, %c0_165] : memref<32x128xf32, #tpu.memory_space<vmem>>, vector<32x128xf32>
    %cst_166 = arith.constant dense<0.000000e+00> : vector<1x128xf32>
    %393 = tpu.matmul %391, %392, %cst_166 {dimension_numbers = #tpu.dot_dimension_numbers<[1], [0], [0], [1], [0, 0, 1, 1], [], []>} : vector<1x32xf32>, vector<32x128xf32>, vector<1x128xf32> -> vector<1x128xf32>
    %c0_167 = arith.constant 0 : index
    %c0_168 = arith.constant 0 : index
    %394 = vector.load %arg6[%c0_167, %c0_168] : memref<32x128xf32, #tpu.memory_space<vmem>>, vector<32x128xf32>
    %cst_169 = arith.constant dense<0.000000e+00> : vector<1x128xf32>
    %395 = tpu.matmul %366, %394, %cst_169 {dimension_numbers = #tpu.dot_dimension_numbers<[1], [0], [0], [1], [0, 0, 1, 1], [], []>} : vector<1x32xf32>, vector<32x128xf32>, vector<1x128xf32> -> vector<1x128xf32>
    %396 = arith.addf %393, %395 : vector<1x128xf32>
    %c0_170 = arith.constant 0 : index
    %c0_171 = arith.constant 0 : index
    %397 = vector.load %arg7[%c0_170, %c0_171] : memref<1x128xf32, #tpu.memory_space<vmem>>, vector<1x128xf32>
    %398 = arith.addf %396, %397 : vector<1x128xf32>
    %cst_172 = arith.constant 5.000000e-01 : f32
    %399 = vector.broadcast %cst_172 : f32 to vector<1x128xf32>
    %400 = arith.mulf %399, %398 : vector<1x128xf32>
    %401 = arith.select %64, %398, %400 : vector<1x128xi1>, vector<1x128xf32>
    %402 = math.tanh %401 : vector<1x128xf32>
    %cst_173 = arith.constant 1.000000e+00 : f32
    %403 = vector.broadcast %cst_173 : f32 to vector<1x128xf32>
    %404 = arith.addf %402, %403 : vector<1x128xf32>
    %cst_174 = arith.constant 5.000000e-01 : f32
    %405 = vector.broadcast %cst_174 : f32 to vector<1x128xf32>
    %406 = arith.mulf %405, %404 : vector<1x128xf32>
    %407 = arith.select %64, %402, %406 : vector<1x128xi1>, vector<1x128xf32>
    %408 = vector.extract_strided_slice %407 {offsets = [0, 0], sizes = [1, 32], strides = [1, 1]} : vector<1x128xf32> to vector<1x32xf32>
    %409 = vector.extract_strided_slice %407 {offsets = [0, 32], sizes = [1, 32], strides = [1, 1]} : vector<1x128xf32> to vector<1x32xf32>
    %410 = vector.extract_strided_slice %407 {offsets = [0, 64], sizes = [1, 32], strides = [1, 1]} : vector<1x128xf32> to vector<1x32xf32>
    %411 = vector.extract_strided_slice %407 {offsets = [0, 96], sizes = [1, 32], strides = [1, 1]} : vector<1x128xf32> to vector<1x32xf32>
    %412 = arith.mulf %409, %364 : vector<1x32xf32>
    %413 = arith.mulf %408, %410 : vector<1x32xf32>
    %414 = arith.addf %412, %413 : vector<1x32xf32>
    %415 = math.tanh %414 : vector<1x32xf32>
    %416 = arith.mulf %411, %415 : vector<1x32xf32>
    %417 = arith.index_cast %c6_i32_156 : i32 to index
    %c0_175 = arith.constant 0 : index
    %418 = vector.load %arg17[%417, %c0_175] : memref<8x32xf32, #tpu.memory_space<vmem>>, vector<1x32xf32>
    tpu.vector_store %arg17[%417, %c0_175], %416 {strides = array<i32>} : memref<8x32xf32, #tpu.memory_space<vmem>>, vector<1x32xf32>,
    %c7_i32_176 = arith.constant 7 : i32
    %419 = arith.index_cast %c7_i32_176 : i32 to index
    %c0_177 = arith.constant 0 : index
    %420 = vector.load %arg16[%419, %c0_177] : memref<8x128xf32, #tpu.memory_space<vmem>>, vector<1x128xf32>
    %c0_178 = arith.constant 0 : index
    %c0_179 = arith.constant 0 : index
    %421 = vector.load %arg3[%c0_178, %c0_179] : memref<32x128xf32, #tpu.memory_space<vmem>>, vector<32x128xf32>
    %cst_180 = arith.constant dense<0.000000e+00> : vector<1x128xf32>
    %422 = tpu.matmul %391, %421, %cst_180 {dimension_numbers = #tpu.dot_dimension_numbers<[1], [0], [0], [1], [0, 0, 1, 1], [], []>} : vector<1x32xf32>, vector<32x128xf32>, vector<1x128xf32> -> vector<1x128xf32>
    %423 = arith.addf %420, %422 : vector<1x128xf32>
    %cst_181 = arith.constant 5.000000e-01 : f32
    %424 = vector.broadcast %cst_181 : f32 to vector<1x128xf32>
    %425 = arith.mulf %424, %423 : vector<1x128xf32>
    %426 = arith.select %64, %423, %425 : vector<1x128xi1>, vector<1x128xf32>
    %427 = math.tanh %426 : vector<1x128xf32>
    %cst_182 = arith.constant 1.000000e+00 : f32
    %428 = vector.broadcast %cst_182 : f32 to vector<1x128xf32>
    %429 = arith.addf %427, %428 : vector<1x128xf32>
    %cst_183 = arith.constant 5.000000e-01 : f32
    %430 = vector.broadcast %cst_183 : f32 to vector<1x128xf32>
    %431 = arith.mulf %430, %429 : vector<1x128xf32>
    %432 = arith.select %64, %427, %431 : vector<1x128xi1>, vector<1x128xf32>
    %433 = vector.extract_strided_slice %432 {offsets = [0, 0], sizes = [1, 32], strides = [1, 1]} : vector<1x128xf32> to vector<1x32xf32>
    %434 = vector.extract_strided_slice %432 {offsets = [0, 32], sizes = [1, 32], strides = [1, 1]} : vector<1x128xf32> to vector<1x32xf32>
    %435 = vector.extract_strided_slice %432 {offsets = [0, 64], sizes = [1, 32], strides = [1, 1]} : vector<1x128xf32> to vector<1x32xf32>
    %436 = vector.extract_strided_slice %432 {offsets = [0, 96], sizes = [1, 32], strides = [1, 1]} : vector<1x128xf32> to vector<1x32xf32>
    %437 = arith.mulf %434, %389 : vector<1x32xf32>
    %438 = arith.mulf %433, %435 : vector<1x32xf32>
    %439 = arith.addf %437, %438 : vector<1x32xf32>
    %440 = math.tanh %439 : vector<1x32xf32>
    %441 = arith.mulf %436, %440 : vector<1x32xf32>
    %c0_184 = arith.constant 0 : index
    %c0_185 = arith.constant 0 : index
    %442 = vector.load %arg5[%c0_184, %c0_185] : memref<32x128xf32, #tpu.memory_space<vmem>>, vector<32x128xf32>
    %cst_186 = arith.constant dense<0.000000e+00> : vector<1x128xf32>
    %443 = tpu.matmul %441, %442, %cst_186 {dimension_numbers = #tpu.dot_dimension_numbers<[1], [0], [0], [1], [0, 0, 1, 1], [], []>} : vector<1x32xf32>, vector<32x128xf32>, vector<1x128xf32> -> vector<1x128xf32>
    %c0_187 = arith.constant 0 : index
    %c0_188 = arith.constant 0 : index
    %444 = vector.load %arg6[%c0_187, %c0_188] : memref<32x128xf32, #tpu.memory_space<vmem>>, vector<32x128xf32>
    %cst_189 = arith.constant dense<0.000000e+00> : vector<1x128xf32>
    %445 = tpu.matmul %416, %444, %cst_189 {dimension_numbers = #tpu.dot_dimension_numbers<[1], [0], [0], [1], [0, 0, 1, 1], [], []>} : vector<1x32xf32>, vector<32x128xf32>, vector<1x128xf32> -> vector<1x128xf32>
    %446 = arith.addf %443, %445 : vector<1x128xf32>
    %c0_190 = arith.constant 0 : index
    %c0_191 = arith.constant 0 : index
    %447 = vector.load %arg7[%c0_190, %c0_191] : memref<1x128xf32, #tpu.memory_space<vmem>>, vector<1x128xf32>
    %448 = arith.addf %446, %447 : vector<1x128xf32>
    %cst_192 = arith.constant 5.000000e-01 : f32
    %449 = vector.broadcast %cst_192 : f32 to vector<1x128xf32>
    %450 = arith.mulf %449, %448 : vector<1x128xf32>
    %451 = arith.select %64, %448, %450 : vector<1x128xi1>, vector<1x128xf32>
    %452 = math.tanh %451 : vector<1x128xf32>
    %cst_193 = arith.constant 1.000000e+00 : f32
    %453 = vector.broadcast %cst_193 : f32 to vector<1x128xf32>
    %454 = arith.addf %452, %453 : vector<1x128xf32>
    %cst_194 = arith.constant 5.000000e-01 : f32
    %455 = vector.broadcast %cst_194 : f32 to vector<1x128xf32>
    %456 = arith.mulf %455, %454 : vector<1x128xf32>
    %457 = arith.select %64, %452, %456 : vector<1x128xi1>, vector<1x128xf32>
    %458 = vector.extract_strided_slice %457 {offsets = [0, 0], sizes = [1, 32], strides = [1, 1]} : vector<1x128xf32> to vector<1x32xf32>
    %459 = vector.extract_strided_slice %457 {offsets = [0, 32], sizes = [1, 32], strides = [1, 1]} : vector<1x128xf32> to vector<1x32xf32>
    %460 = vector.extract_strided_slice %457 {offsets = [0, 64], sizes = [1, 32], strides = [1, 1]} : vector<1x128xf32> to vector<1x32xf32>
    %461 = vector.extract_strided_slice %457 {offsets = [0, 96], sizes = [1, 32], strides = [1, 1]} : vector<1x128xf32> to vector<1x32xf32>
    %462 = arith.mulf %459, %414 : vector<1x32xf32>
    %463 = arith.mulf %458, %460 : vector<1x32xf32>
    %464 = arith.addf %462, %463 : vector<1x32xf32>
    %465 = math.tanh %464 : vector<1x32xf32>
    %466 = arith.mulf %461, %465 : vector<1x32xf32>
    %467 = arith.index_cast %c7_i32_176 : i32 to index
    %c0_195 = arith.constant 0 : index
    %468 = vector.load %arg17[%467, %c0_195] : memref<8x32xf32, #tpu.memory_space<vmem>>, vector<1x32xf32>
    tpu.vector_store %arg17[%467, %c0_195], %466 {strides = array<i32>} : memref<8x32xf32, #tpu.memory_space<vmem>>, vector<1x32xf32>,
    %c8_i32_196 = arith.constant 8 : i32
    %c0_197 = arith.constant 0 : index
    %c0_198 = arith.constant 0 : index
    %469 = vector.load %arg13[%c0_197, %c0_198] : memref<2x32xf32, #tpu.memory_space<vmem>>, vector<1x32xf32>
    tpu.vector_store %arg13[%c0_197, %c0_198], %441 {strides = array<i32>} : memref<2x32xf32, #tpu.memory_space<vmem>>, vector<1x32xf32>,
    %c1_199 = arith.constant 1 : index
    %c0_200 = arith.constant 0 : index
    %470 = vector.load %arg13[%c1_199, %c0_200] : memref<2x32xf32, #tpu.memory_space<vmem>>, vector<1x32xf32>
    tpu.vector_store %arg13[%c1_199, %c0_200], %466 {strides = array<i32>} : memref<2x32xf32, #tpu.memory_space<vmem>>, vector<1x32xf32>,
    %c0_201 = arith.constant 0 : index
    %c0_202 = arith.constant 0 : index
    %471 = vector.load %arg14[%c0_201, %c0_202] : memref<2x32xf32, #tpu.memory_space<vmem>>, vector<1x32xf32>
    tpu.vector_store %arg14[%c0_201, %c0_202], %439 {strides = array<i32>} : memref<2x32xf32, #tpu.memory_space<vmem>>, vector<1x32xf32>,
    %c1_203 = arith.constant 1 : index
    %c0_204 = arith.constant 0 : index
    %472 = vector.load %arg14[%c1_203, %c0_204] : memref<2x32xf32, #tpu.memory_space<vmem>>, vector<1x32xf32>
    tpu.vector_store %arg14[%c1_203, %c0_204], %464 {strides = array<i32>} : memref<2x32xf32, #tpu.memory_space<vmem>>, vector<1x32xf32>,
    %c0_205 = arith.constant 0 : index
    %c0_206 = arith.constant 0 : index
    %473 = vector.load %arg17[%c0_205, %c0_206] : memref<8x32xf32, #tpu.memory_space<vmem>>, vector<8x32xf32>
    %c0_207 = arith.constant 0 : index
    %c0_208 = arith.constant 0 : index
    %474 = vector.load %arg8[%c0_207, %c0_208] : memref<32x128xf32, #tpu.memory_space<vmem>>, vector<32x128xf32>
    %cst_209 = arith.constant dense<0.000000e+00> : vector<8x128xf32>
    %475 = tpu.matmul %473, %474, %cst_209 {dimension_numbers = #tpu.dot_dimension_numbers<[1], [0], [0], [1], [0, 0, 1, 1], [], []>} : vector<8x32xf32>, vector<32x128xf32>, vector<8x128xf32> -> vector<8x128xf32>
    %c0_210 = arith.constant 0 : index
    %c0_211 = arith.constant 0 : index
    %476 = vector.load %arg9[%c0_210, %c0_211] : memref<1x128xf32, #tpu.memory_space<vmem>>, vector<1x128xf32>
    %477 = vector.broadcast %476 : vector<1x128xf32> to vector<8x128xf32>
    %478 = arith.addf %475, %477 : vector<8x128xf32>
    %cst_212 = arith.constant dense<0xFF800000> : vector<8xf32>
    %479 = vector.multi_reduction <maximumf>, %478, %cst_212 [1] : vector<8x128xf32> to vector<8xf32>
    %480 = vector.shape_cast %479 : vector<8xf32> to vector<8x1xf32>
    %481 = vector.broadcast %480 : vector<8x1xf32> to vector<8x128xf32>
    %482 = arith.subf %478, %481 : vector<8x128xf32>
    %483 = math.exp %482 : vector<8x128xf32>
    %cst_213 = arith.constant dense<0.000000e+00> : vector<8xf32>
    %484 = vector.multi_reduction <add>, %483, %cst_213 [1] : vector<8x128xf32> to vector<8xf32>
    %485 = vector.shape_cast %484 : vector<8xf32> to vector<8x1xf32>
    %486 = math.log %485 : vector<8x1xf32>
    %487 = arith.addf %480, %486 : vector<8x1xf32>
    %488 = vector.broadcast %487 : vector<8x1xf32> to vector<8x128xf32>
    %489 = arith.subf %478, %488 : vector<8x128xf32>
    %c0_214 = arith.constant 0 : index
    %c0_215 = arith.constant 0 : index
    %490 = vector.load %arg12[%c0_214, %c0_215] : memref<8x128xf32, #tpu.memory_space<vmem>>, vector<8x128xf32>
    tpu.vector_store %arg12[%c0_214, %c0_215], %489 {strides = array<i32>} : memref<8x128xf32, #tpu.memory_space<vmem>>, vector<8x128xf32>,
    return
  }
}

</mosaic_0001>

<bundles_post_ra>
// kernel: tpu_custom_call.1
= control target key start
LH: loop header
LB: loop body
LE: loop exit
PB: predicated region body
PF: predicated region fallthrough
CT: control target
= control target key end

     0   :  { %20 = vsyncpa [#allocation8], 0  ;;  %s2170_s0 = inlined_call_operand.hbm [shape: s32[8], index: 0, kind: input, shape index: {}]   ;;  %s2171_s1 = inlined_call_operand.vmem [shape: f32[64,32], index: 1, kind: input, shape index: {}]   ;;  %s2172_s2 = inlined_call_operand.vmem [shape: f32[32,128], index: 2, kind: input, shape index: {}]   ;;  %s2173_s3 = inlined_call_operand.vmem [shape: f32[32,128], index: 3, kind: input, shape index: {}]   ;;  %s2174_s4 = inlined_call_operand.vmem [shape: f32[1,128], index: 4, kind: input, shape index: {}]   ;;  %s2175_s5 = inlined_call_operand.vmem [shape: f32[32,128], index: 5, kind: input, shape index: {}]   ;;  %s2176_s6 = inlined_call_operand.hbm [shape: f32[32,128], index: 6, kind: input, shape index: {}]   ;;  %s2177_s7 = inlined_call_operand.hbm [shape: f32[1,128], index: 7, kind: input, shape index: {}]   ;;  %s2178_s8 = inlined_call_operand.hbm [shape: f32[32,128], index: 8, kind: input, shape index: {}]   ;;  %s2179_s9 = inlined_call_operand.vmem [shape: f32[1,128], index: 9, kind: input, shape index: {}]   ;;  %s2180_s10 = inlined_call_operand.vmem [shape: f32[2,32], index: 10, kind: input, shape index: {}]   ;;  %s2181_s11 = inlined_call_operand.vmem [shape: f32[2,32], index: 11, kind: input, shape index: {}]   ;;  %s2182_s12 = inlined_call_operand.hbm [shape: f32[8,128], index: 12, kind: output, shape index: {0}]   ;;  %s2183_s13 = inlined_call_operand.hbm [shape: f32[2,32], index: 13, kind: output, shape index: {1}]   ;;  %s2184_s14 = inlined_call_operand.hbm [shape: f32[2,32], index: 14, kind: output, shape index: {2}]  }
   0x1   :  { %21 = vsyncpa [#allocation6], 0 }
   0x2   :  { %22 = vsyncpa [#allocation11], 0 }
   0x3   :  { %23 = vsyncpa [#allocation7], 0  ;;  %s62_s15 = sshll.u32 %s2177_s7, 4  ;;  %s63_s15 = int_to_ptr.hbm [resolvable:$true] %s62_s15 }
   0x4   :  { %24 = vsyncpa [#allocation15], 0  ;;  %s1663_s16 = smov [#allocation10]   ;;  %s30_s20 = sshll.u32 %s2170_s0, 4  ;;  %s31_s20 = int_to_ptr.hbm [resolvable:$true] %s30_s20 }
   0x5   :  { %s64_s17 = sshll.u32 %s1663_s16, 4  ;;  %s1664_s21 = smov [#allocation5]   ;;  %s65_s17 = int_to_ptr.vmem [resolvable:$true] %s64_s17 }
   0x6   :  { %67 = dma.hbm_to_vmem [thread:$0]  %s63_s15, 16, %s65_s17, [#allocation11]  }
   0x7   :  { %33 = dma.hbm_to_smem %s31_s20, 16, %s1664_s21, [#allocation8]  }
   0x8   :  { %s48_s24 = sshll.u32 %s2176_s6, 4  ;;  %s1665_s25 = smov [#allocation9]   ;;  %s49_s24 = int_to_ptr.hbm [resolvable:$true] %s48_s24 }
   0x9   :  { %s50_s7 = sshll.u32 %s1665_s25, 4  ;;  %s72_s28 = sshll.u32 %s2178_s8, 4  ;;  %s51_s7 = int_to_ptr.vmem [resolvable:$true] %s50_s7  ;;  %s73_s28 = int_to_ptr.hbm [resolvable:$true] %s72_s28 }
   0xa   :  { %s1666_s29 = smov 128   ;;  %s1667_s30 = smov 8  }
   0xb   :  { %56 = dma.hbm_to_vmem [thread:$0]  %s49_s24, 512, %s51_s7, [#allocation6], %s1666_s29, %s1666_s29, %s1667_s30  }
   0xc   :  { %s1668_s0 = smov [#allocation12]  }
   0xd   :  { %s74_s15 = sshll.u32 %s1668_s0, 4  ;;  %s75_s15 = int_to_ptr.vmem [resolvable:$true] %s74_s15 }
   0xe   :  { %80 = dma.hbm_to_vmem [thread:$0]  %s73_s28, 512, %s75_s15, [#allocation11], %s1666_s29, %s1666_s29, %s1667_s30  }
   0xf   :  { %1653 = dma.done.wait [#allocation8], 16  }
  0x10   :  { %1654 = vsyncadd [#allocation8], 4294967280 }
  0x11   :  { %1655 = dma.done.wait [#allocation6], 512  }
  0x12   :  { %1656 = vsyncadd [#allocation6], 4294966784 }
  0x13   :  { %1657 = dma.done.wait [#allocation11], 528  }
  0x14   :  { %1658 = vsyncadd [#allocation11], 4294966768 }
  0x15   :  { %103 = sfence }
  0x16   :  { %v144_v0 = vld [vmem:[%s2172_s2 + $0x18] sm:$0xff]  ;;  %v143_v1 = vld [vmem:[%s2172_s2 + $0x10] sm:$0xff]  ;;  %vm104_vm0 = vcmask 261120   ;;  %v1669_v2 = vmov 0.0   ;;  %s107_s18 = sld [smem:[#allocation5]]  ;;  %v142_v5 = vld [vmem:[%s2172_s2 + $0x8] sm:$0xff]  ;;  %v173_v22 = vlaneseq }
  0x17   :  { %164 = vmatpush.msra.mxu0 %v144_v0  ;;  %105 = vst.msk [vmem:[#allocation2] sm:$0xff] %vm104_vm0, %v1669_v2  ;;  %v1773_v3 = vld [vmem:[%s2173_s3 + $0x18] sm:$0xff]  ;;  %v1778_v4 = vld [vmem:[%s2173_s3 + $0x10] sm:$0xff]  ;;  %s1381_s25 = sld [smem:[#allocation5 + $0x1]]  ;;  %v1788_v6 = vld [vmem:[%s2173_s3 + $0x8] sm:$0xff]  ;;  %vm110_vm1 = vcmask 253952  }
  0x18   :  { %106 = vst.msk [vmem:[#allocation4] sm:$0xff] %vm104_vm0, %v1669_v2  ;;  %202 = vmatpush.msra.mxu1 %v1773_v3  ;;  %s1382_s7 = sld [smem:[#allocation5 + $0x2]]  ;;  %v141_v7 = vld [vmem:[%s2172_s2] sm:$0xff]  ;;  %v174_v23 = vand.u32 127, %v173_v22  ;;  %v1863_v42 = vld [vmem:[#allocation9 + $0x18] sm:$0xff]  ;;  %v1868_v43 = vld [vmem:[%s2175_s5 + $0x18] sm:$0xff] }
  0x19   :  { %165 = vmatpush.msra.mxu0 %v143_v1  ;;  %s1383_s30 = sld [smem:[#allocation5 + $0x3]]  ;;  %v1797_v8 = vld [vmem:[%s2173_s3] sm:$0xff]  ;;  %v1870_v44 = vld [vmem:[#allocation9 + $0x10] sm:$0xff]  ;;  %261 = vmatpush.msra.mxu2 %v1863_v42  ;;  %v1877_v45 = vld [vmem:[%s2175_s5 + $0x10] sm:$0xff]  ;;  %s1341_s22 = sshll.u32 %s2183_s13, 4  ;;  %s1342_s22 = int_to_ptr.hbm [resolvable:$true] %s1341_s22 }
  0x1a   :  { %203 = vmatpush.msra.mxu1 %v1778_v4  ;;  %s1384_s0 = sld [smem:[#allocation5 + $0x4]]  ;;  %v178_v9 = vld [vmem:[%s2180_s10] sm:$0x1]  ;;  %vm175_vm2 = vcmp.ge.s32.totalorder %v174_v23, 64  ;;  %vm176_vm3 = vcmp.lt.s32.totalorder %v174_v23, 96  ;;  %286 = vmatpush.msra.mxu3 %v1868_v43  ;;  %v1884_v47 = vld [vmem:[%s2175_s5 + $0x8] sm:$0xff] }
  0x1b   :  { %166 = vmatpush.msra.mxu0 %v142_v5  ;;  %s1385_s16 = sld [smem:[#allocation5 + $0x5]]  ;;  %v1427_v19 = vld [vmem:[%s2174_s4] ss:$0 sm:$0xff]  ;;  %vm1845_vm4 = vmand %vm175_vm2, %vm176_vm3  ;;  %262 = vmatpush.msra.mxu2 %v1870_v44  ;;  %v1890_v48 = vld [vmem:[#allocation9] sm:$0xff]  ;;  %s1675_s13 = smov [#allocation13]  }
  0x1c   :  { %204 = vmatpush.msra.mxu1 %v1788_v6  ;;  %s108_s20 = scalar_lea.vmem %s2171_s1, %s107_s18  ;;  %s1386_s21 = sld [smem:[#allocation5 + $0x6]]  ;;  %v179_v34 = vld [vmem:[%s2181_s11] sm:$0x1]  ;;  %287 = vmatpush.msra.mxu3 %v1877_v45  ;;  %v180_v52 = vld [vmem:[%s2180_s10 + $0x1] sm:$0x1]  ;;  %v1283_v27 = vld [vmem:[#allocation12 + $0x18] sm:$0xff] }
  0x1d   :  { %167 = vmatpush.msra.mxu0 %v141_v7  ;;  %v109_v10 = vld [vmem:[%s108_s20] sm:$0x1]  ;;  %s113_s3 = scalar_lea.vmem %s2171_s1, %s1381_s25  ;;  %s1387_s24 = sld [smem:[#allocation5 + $0x7]]  ;;  %v294_v61 = vld [vmem:[#allocation10] sm:$0x1] }
  0x1e   :  { %205 = vmatpush.msra.mxu1 %v1797_v8  ;;  %111 = vst.msk [vmem:[#allocation2] sm:$0x1] %vm110_vm1, %v109_v10  ;;  %v114_v11 = vld [vmem:[%s113_s3] sm:$0x1]  ;;  %s117_s28 = scalar_lea.vmem %s2171_s1, %s1382_s7  ;;  %288 = vmatpush.msra.mxu3 %v1884_v47  ;;  %s1674_s3 = smov [#allocation16]  }
  0x1f   :  { %345 = vmatpush.msrb.mxu0 %v1773_v3  ;;  %1389 = vmatmul.msk.f32.vlgmr.msra.gmra.mxu1 %vm104_vm0, %v178_v9  ;;  %115 = vst.msk [vmem:[#allocation2 + $0x1] sm:$0x1] %vm110_vm1, %v114_v11  ;;  %v118_v12 = vld [vmem:[%s117_s28] sm:$0x1]  ;;  %s121_s25 = scalar_lea.vmem %s2171_s1, %s1383_s30  ;;  %s1330_s28 = sshll.u32 %s2182_s12, 4  ;;  %s1331_s28 = int_to_ptr.hbm [resolvable:$true] %s1330_s28 }
  0x20   :  { %119 = vst.msk [vmem:[#allocation2 + $0x2] sm:$0x1] %vm110_vm1, %v118_v12  ;;  %v122_v13 = vld [vmem:[%s121_s25] sm:$0x1]  ;;  %s125_s8 = scalar_lea.vmem %s2171_s1, %s1384_s0  ;;  %399 = vmatpush.msrb.mxu1 %v1863_v42  ;;  %v181_v12 = vld [vmem:[%s2181_s11 + $0x1] sm:$0x1] }
  0x21   :  { %346 = vmatpush.msrb.mxu0 %v1778_v4  ;;  %123 = vst.msk [vmem:[#allocation2 + $0x3] sm:$0x1] %vm110_vm1, %v122_v13  ;;  %v126_v14 = vld [vmem:[%s125_s8] sm:$0x1]  ;;  %s129_s2 = scalar_lea.vmem %s2171_s1, %s1385_s16 }
  0x22   :  { %127 = vst.msk [vmem:[#allocation2 + $0x4] sm:$0x1] %vm110_vm1, %v126_v14  ;;  %v130_v15 = vld [vmem:[%s129_s2] sm:$0x1]  ;;  %s133_s20 = scalar_lea.vmem %s2171_s1, %s1386_s21  ;;  %400 = vmatpush.msrb.mxu1 %v1870_v44  ;;  %s1352_s21 = sshll.u32 %s2184_s14, 4  ;;  %s1353_s21 = int_to_ptr.hbm [resolvable:$true] %s1352_s21 }
  0x23   :  { %347 = vmatpush.msrb.mxu0 %v1788_v6  ;;  %131 = vst.msk [vmem:[#allocation2 + $0x5] sm:$0x1] %vm110_vm1, %v130_v15  ;;  %v134_v16 = vld [vmem:[%s133_s20] sm:$0x1]  ;;  %s137_s23 = scalar_lea.vmem %s2171_s1, %s1387_s24  ;;  %s1670_s1 = smov 64  }
  0x24   :  { %135 = vst.msk [vmem:[#allocation2 + $0x6] sm:$0x1] %vm110_vm1, %v134_v16  ;;  %v138_v17 = vld [vmem:[%s137_s23] sm:$0x1]  ;;  %s1671_s24 = smov 32   ;;  %s1673_s23 = smov [#allocation14]  }
  0x25   :  { %348 = vmatpush.msrb.mxu0 %v1797_v8  ;;  %139 = vst.msk [vmem:[#allocation2 + $0x7] sm:$0x1] %vm110_vm1, %v138_v17  ;;  %v1879_v46 = vld [vmem:[#allocation9 + $0x8] sm:$0xff]  ;;  %s1339_s16 = sshll.u32 %s1673_s23, 4  ;;  %s1340_s16 = int_to_ptr.vmem [resolvable:$true] %s1339_s16 }
  0x26   :  { %v1895_v49 = vld [vmem:[%s2175_s5] sm:$0xff]  ;;  %263 = vmatpush.msra.mxu2 %v1879_v46  ;;  %401 = vmatpush.msrb.mxu1 %v1879_v46 }
  0x27   :  { %289 = vmatpush.msra.mxu3 %v1895_v49 }
  0x28   :  { %264 = vmatpush.msra.mxu2 %v1890_v48  ;;  %402 = vmatpush.msrb.mxu1 %v1890_v48 }
  0x29   :  { %479 = vmatpush.msrb.mxu3 %v1773_v3  ;;  %1390 = vmatmul.msk.f32.vlgmr.msra.gmra.mxu2 %vm104_vm0, %v180_v52 }
  0x2a   :  { %424 = vmatpush.msrb.mxu2 %v1868_v43  ;;  %558 = vmatpush.msra.mxu1 %v1868_v43 }
  0x2b   :  { %480 = vmatpush.msrb.mxu3 %v1778_v4 }
  0x2c   :  { %v140_v18 = vld [vmem:[#allocation2] sm:$0xff]  ;;  %425 = vmatpush.msrb.mxu2 %v1877_v45  ;;  %559 = vmatpush.msra.mxu1 %v1877_v45 }
  0x2d   :  { %1388 = vmatmul.msk.f32.vlgmr.msra.gmra.mxu0 %vm104_vm0, %v140_v18  ;;  %481 = vmatpush.msrb.mxu3 %v1788_v6 }
  0x2e   :  { %533 = vmatpush.msra.mxu0 %v1863_v42  ;;  %426 = vmatpush.msrb.mxu2 %v1884_v47 }
  0x2f   :  { %482 = vmatpush.msrb.mxu3 %v1797_v8  ;;  %560 = vmatpush.msra.mxu1 %v1884_v47 }
  0x30   :  { %534 = vmatpush.msra.mxu0 %v1870_v44  ;;  %427 = vmatpush.msrb.mxu2 %v1895_v49 }
  0x31   :  { %561 = vmatpush.msra.mxu1 %v1895_v49 }
  0x32   :  { %535 = vmatpush.msra.mxu0 %v1879_v46  ;;  %613 = vmatpush.msra.mxu2 %v1773_v3 }
  0x34   :  { %536 = vmatpush.msra.mxu0 %v1890_v48  ;;  %614 = vmatpush.msra.mxu2 %v1778_v4 }
  0x36   :  { %615 = vmatpush.msra.mxu2 %v1788_v6 }
  0x38   :  { %616 = vmatpush.msra.mxu2 %v1797_v8 }
  0x9c   :  { %v207_v24 = vpop.f32.mrf.mxu1 }
  0xaa   :  { %v169_v20 = vpop.f32.mrf.mxu0 }
  0xab   :  { %v170_v21 = vadd.f32 %v1427_v19, %v169_v20 }
  0xac   :  { %v266_v58 = vpop.f32.mrf.mxu2 }
  0xad   :  { %172 = vst [vmem:[#allocation3] sm:$0xff] %v170_v21 }
  0xb4   :  { %v182_v25 = vld [vmem:[#allocation3] sm:$0x1]  ;;  %v328_v54 = vld [vmem:[#allocation3 + $0x1] sm:$0x1] }
  0xb5   :  { %v210_v26 = vadd.f32 %v207_v24, %v182_v25 }
  0xb7   :  { %v211_v28 = vmul.f32 0.5, %v210_v26 }
  0xb9   :  { %v212_v29 = vsel %vm1845_vm4, %v210_v26, %v211_v28 }
  0xba   :  { %1429 = vtanh.f32 %v212_v29 }
  0xc0   :  { %v1430_v30 = vpop.eup %1429 }
  0xc1   :  { %v214_v31 = vadd.f32 1.0, %v1430_v30 }
  0xc3   :  { %v215_v32 = vmul.f32 0.5, %v214_v31 }
  0xc5   :  { %v216_v33 = vsel %vm1845_vm4, %v1430_v30, %v215_v32 }
  0xc6   :  { %223 = vrot.lane.b32.xlu0 %v216_v33, %s1670_s1 }
  0xce   :  { %218 = vrot.lane.b32.xlu0 %v179_v34, %s1671_s24 }
 0x138   :  { %v224_v35 = vpop.permute.xlu0 %223 }
 0x139   :  { %v226_v36 = vmul.f32 %v224_v35, %v216_v33  ;;  %v462_v35 = vld [vmem:[#allocation3 + $0x2] sm:$0x1] }
 0x13b   :  { %228 = vrot.lane.b32.xlu1 %v226_v36, %s1671_s24 }
 0x140   :  { %v219_v37 = vpop.permute.xlu0 %218 }
 0x141   :  { %v221_v38 = vmul.f32 %v219_v37, %v216_v33 }
 0x1ad   :  { %v229_v39 = vpop.permute.xlu1 %228 }
 0x1ae   :  { %v1859_v40 = vadd.f32 %v229_v39, %v221_v38 }
 0x1b0   :  { %1431 = vtanh.f32 %v1859_v40 }
 0x1b6   :  { %v1432_v41 = vpop.eup %1431 }
 0x1b7   :  { %234 = vrot.lane.b32.xlu1 %v1432_v41, %s1670_s1 }
 0x229   :  { %v235_v50 = vpop.permute.xlu1 %234 }
 0x22a   :  { %v237_v51 = vmul.f32 %v235_v50, %v216_v33 }
 0x22c   :  { %270 = vrot.lane.b32.xlu2 %v237_v51, %s1671_s24 }
 0x286   :  { %v271_v53 = vpop.permute.xlu2 %270 }
 0x287   :  { %1391 = vmatmul.msk.f32.vlgmr.msra.gmra.mxu3 %vm104_vm0, %v271_v53  ;;  %1392 = vmatmul.msk.f32.vlgmr.msrb.gmra.mxu0 %vm104_vm0, %v271_v53 }
 0x288   :  { %692 = vmatpush.msrb.mxu0 %v1868_v43  ;;  %667 = vmatpush.msra.mxu3 %v1863_v42 }
 0x28a   :  { %693 = vmatpush.msrb.mxu0 %v1877_v45  ;;  %668 = vmatpush.msra.mxu3 %v1870_v44 }
 0x28c   :  { %694 = vmatpush.msrb.mxu0 %v1884_v47  ;;  %669 = vmatpush.msra.mxu3 %v1879_v46 }
 0x28e   :  { %695 = vmatpush.msrb.mxu0 %v1895_v49  ;;  %670 = vmatpush.msra.mxu3 %v1890_v48 }
 0x304   :  { %v350_v55 = vpop.f32.mrf.mxu0 }
 0x305   :  { %v353_v56 = vadd.f32 %v350_v55, %v328_v54 }
 0x307   :  { %v354_v57 = vmul.f32 0.5, %v353_v56 }
 0x309   :  { %v355_v59 = vsel %vm1845_vm4, %v353_v56, %v354_v57 }
 0x30a   :  { %1433 = vtanh.f32 %v355_v59  ;;  %v291_v60 = vpop.f32.mrf.mxu3 }
 0x30b   :  { %v292_v62 = vadd.f32 %v291_v60, %v266_v58 }
 0x30d   :  { %v295_v63 = vadd.f32 %v294_v61, %v292_v62 }
 0x30f   :  { %v296_v0 = vmul.f32 0.5, %v295_v63 }
 0x310   :  { %v1434_v1 = vpop.eup %1433 }
 0x311   :  { %v297_v2 = vsel %vm1845_vm4, %v295_v63, %v296_v0  ;;  %v357_v5 = vadd.f32 1.0, %v1434_v1 }
 0x312   :  { %1435 = vtanh.f32 %v297_v2 }
 0x313   :  { %v358_v7 = vmul.f32 0.5, %v357_v5 }
 0x315   :  { %v359_v9 = vsel %vm1845_vm4, %v1434_v1, %v358_v7 }
 0x316   :  { %362 = vrot.lane.b32.xlu2 %v359_v9, %s1670_s1  ;;  %v360_v19 = vmul.f32 %v359_v9, %v1859_v40  ;;  %v432_v40 = vld [vmem:[#allocation10] sm:$0x1] }
 0x318   :  { %v1436_v10 = vpop.eup %1435 }
 0x319   :  { %v299_v11 = vadd.f32 1.0, %v1436_v10 }
 0x31b   :  { %v300_v13 = vmul.f32 0.5, %v299_v11 }
 0x31d   :  { %v301_v14 = vsel %vm1845_vm4, %v1436_v10, %v300_v13 }
 0x31e   :  { %303 = vrot.lane.b32.xlu2 %v181_v12, %s1671_s24  ;;  %308 = vrot.lane.b32.xlu0 %v301_v14, %s1670_s1 }
 0x370   :  { %v363_v15 = vpop.permute.xlu2 %362 }
 0x371   :  { %v365_v16 = vmul.f32 %v363_v15, %v359_v9 }
 0x373   :  { %367 = vrot.lane.b32.xlu1 %v365_v16, %s1671_s24 }
 0x378   :  { %v304_v23 = vpop.permute.xlu2 %303 }
 0x379   :  { %v306_v24 = vmul.f32 %v304_v23, %v301_v14  ;;  %v566_v23 = vld [vmem:[#allocation10] sm:$0x1] }
 0x390   :  { %v309_v17 = vpop.permute.xlu0 %308 }
 0x391   :  { %v311_v18 = vmul.f32 %v309_v17, %v301_v14 }
 0x393   :  { %313 = vrot.lane.b32.xlu0 %v311_v18, %s1671_s24 }
 0x3e5   :  { %v368_v20 = vpop.permute.xlu1 %367 }
 0x3e6   :  { %v1955_v21 = vadd.f32 %v368_v20, %v360_v19 }
 0x3e8   :  { %1437 = vtanh.f32 %v1955_v21 }
 0x3ee   :  { %v1438_v22 = vpop.eup %1437 }
 0x3ef   :  { %373 = vrot.lane.b32.xlu1 %v1438_v22, %s1670_s1 }
 0x405   :  { %v314_v25 = vpop.permute.xlu0 %313 }
 0x406   :  { %v316_v26 = vadd.f32 %v314_v25, %v306_v24 }
 0x408   :  { %1439 = vtanh.f32 %v316_v26 }
 0x40e   :  { %v1440_v28 = vpop.eup %1439 }
 0x40f   :  { %319 = vrot.lane.b32.xlu2 %v1440_v28, %s1670_s1  ;;  %v596_v28 = vld [vmem:[#allocation3 + $0x3] sm:$0x1] }
 0x461   :  { %v374_v29 = vpop.permute.xlu1 %373 }
 0x462   :  { %v376_v30 = vmul.f32 %v374_v29, %v359_v9 }
 0x464   :  { %408 = vrot.lane.b32.xlu0 %v376_v30, %s1671_s24 }
 0x469   :  { %v320_v31 = vpop.permute.xlu2 %319 }
 0x46a   :  { %v322_v32 = vmul.f32 %v320_v31, %v301_v14 }
 0x46c   :  { %324 = vrot.lane.b32.xlu1 %v322_v32, %s1671_s24 }
 0x4d6   :  { %v409_v33 = vpop.permute.xlu0 %408 }
 0x4d7   :  { %1394 = vmatmul.msk.f32.vlgmr.msrb.gmra.mxu2 %vm104_vm0, %v409_v33  ;;  %1395 = vmatmul.msk.f32.vlgmr.msrb.gmra.mxu3 %vm104_vm0, %v409_v33 }
 0x4d8   :  { %826 = vmatpush.msrb.mxu3 %v1868_v43  ;;  %801 = vmatpush.msrb.mxu2 %v1863_v42 }
 0x4da   :  { %827 = vmatpush.msrb.mxu3 %v1877_v45  ;;  %802 = vmatpush.msrb.mxu2 %v1870_v44 }
 0x4dc   :  { %828 = vmatpush.msrb.mxu3 %v1884_v47  ;;  %803 = vmatpush.msrb.mxu2 %v1879_v46 }
 0x4de   :  { %v325_v34 = vpop.permute.xlu1 %324  ;;  %829 = vmatpush.msrb.mxu3 %v1895_v49  ;;  %804 = vmatpush.msrb.mxu2 %v1890_v48 }
 0x4df   :  { %327 = vst.msk [vmem:[#allocation4] sm:$0x1] %vm110_vm1, %v325_v34  ;;  %1393 = vmatmul.msk.f32.vlgmr.msrb.gmra.mxu1 %vm104_vm0, %v325_v34 }
 0x4e0   :  { %747 = vmatpush.msrb.mxu1 %v1773_v3 }
 0x4e2   :  { %748 = vmatpush.msrb.mxu1 %v1778_v4 }
 0x4e4   :  { %749 = vmatpush.msrb.mxu1 %v1788_v6 }
 0x4e6   :  { %750 = vmatpush.msrb.mxu1 %v1797_v8 }
 0x55a   :  { %v484_v36 = vpop.f32.mrf.mxu3  ;;  %v429_v38 = vpop.f32.mrf.mxu2 }
 0x55b   :  { %v487_v37 = vadd.f32 %v484_v36, %v462_v35 }
 0x55c   :  { %v404_v39 = vpop.f32.mrf.mxu1 }
 0x55d   :  { %v488_v41 = vmul.f32 0.5, %v487_v37  ;;  %v430_v50 = vadd.f32 %v429_v38, %v404_v39 }
 0x55f   :  { %v489_v51 = vsel %vm1845_vm4, %v487_v37, %v488_v41  ;;  %v433_v52 = vadd.f32 %v432_v40, %v430_v50 }
 0x560   :  { %1441 = vtanh.f32 %v489_v51 }
 0x561   :  { %v434_v53 = vmul.f32 0.5, %v433_v52 }
 0x563   :  { %v435_v54 = vsel %vm1845_vm4, %v433_v52, %v434_v53 }
 0x564   :  { %1443 = vtanh.f32 %v435_v54 }
 0x566   :  { %v1442_v55 = vpop.eup %1441 }
 0x567   :  { %v491_v56 = vadd.f32 1.0, %v1442_v55 }
 0x569   :  { %v492_v57 = vmul.f32 0.5, %v491_v56 }
 0x56a   :  { %v1444_v58 = vpop.eup %1443 }
 0x56b   :  { %v493_v59 = vsel %vm1845_vm4, %v1442_v55, %v492_v57  ;;  %v437_v60 = vadd.f32 1.0, %v1444_v58 }
 0x56c   :  { %496 = vrot.lane.b32.xlu0 %v493_v59, %s1670_s1  ;;  %v494_v5 = vmul.f32 %v493_v59, %v1955_v21 }
 0x56d   :  { %v438_v61 = vmul.f32 0.5, %v437_v60 }
 0x56f   :  { %v439_v62 = vsel %vm1845_vm4, %v1444_v58, %v438_v61 }
 0x570   :  { %442 = vrot.lane.b32.xlu2 %v439_v62, %s1670_s1  ;;  %v440_v10 = vmul.f32 %v439_v62, %v316_v26 }
 0x5ca   :  { %v443_v63 = vpop.permute.xlu2 %442 }
 0x5cb   :  { %v445_v0 = vmul.f32 %v443_v63, %v439_v62 }
 0x5cd   :  { %447 = vrot.lane.b32.xlu1 %v445_v0, %s1671_s24 }
 0x5de   :  { %v497_v1 = vpop.permute.xlu0 %496 }
 0x5df   :  { %v499_v2 = vmul.f32 %v497_v1, %v493_v59 }
 0x5e1   :  { %501 = vrot.lane.b32.xlu2 %v499_v2, %s1671_s24 }
 0x63b   :  { %v502_v7 = vpop.permute.xlu2 %501 }
 0x63c   :  { %v1991_v9 = vadd.f32 %v502_v7, %v494_v5 }
 0x63e   :  { %1445 = vtanh.f32 %v1991_v9 }
 0x63f   :  { %v448_v11 = vpop.permute.xlu1 %447 }
 0x640   :  { %v1994_v12 = vadd.f32 %v448_v11, %v440_v10 }
 0x642   :  { %1447 = vtanh.f32 %v1994_v12 }
 0x644   :  { %v1446_v13 = vpop.eup %1445 }
 0x645   :  { %507 = vrot.lane.b32.xlu1 %v1446_v13, %s1670_s1 }
 0x648   :  { %v1448_v14 = vpop.eup %1447 }
 0x649   :  { %453 = vrot.lane.b32.xlu0 %v1448_v14, %s1670_s1  ;;  %v700_v14 = vld [vmem:[#allocation10] sm:$0x1] }
 0x6b7   :  { %v508_v15 = vpop.permute.xlu1 %507 }
 0x6b8   :  { %v510_v16 = vmul.f32 %v508_v15, %v493_v59 }
 0x6ba   :  { %542 = vrot.lane.b32.xlu0 %v510_v16, %s1671_s24 }
 0x6bb   :  { %v454_v17 = vpop.permute.xlu0 %453 }
 0x6bc   :  { %v456_v18 = vmul.f32 %v454_v17, %v439_v62 }
 0x6be   :  { %458 = vrot.lane.b32.xlu2 %v456_v18, %s1671_s24 }
 0x718   :  { %v459_v19 = vpop.permute.xlu2 %458 }
 0x719   :  { %461 = vst.msk [vmem:[#allocation4 + $0x1] sm:$0x1] %vm110_vm1, %v459_v19  ;;  %1396 = vmatmul.msk.f32.vlgmr.msra.gmra.mxu0 %vm104_vm0, %v459_v19 }
 0x71a   :  { %881 = vmatpush.msra.mxu0 %v1773_v3 }
 0x71c   :  { %882 = vmatpush.msra.mxu0 %v1778_v4 }
 0x71e   :  { %883 = vmatpush.msra.mxu0 %v1788_v6 }
 0x720   :  { %884 = vmatpush.msra.mxu0 %v1797_v8 }
 0x72c   :  { %v543_v20 = vpop.permute.xlu0 %542 }
 0x72d   :  { %1397 = vmatmul.msk.f32.vlgmr.msra.gmra.mxu1 %vm104_vm0, %v543_v20  ;;  %1398 = vmatmul.msk.f32.vlgmr.msra.gmra.mxu2 %vm104_vm0, %v543_v20 }
 0x72e   :  { %960 = vmatpush.msra.mxu2 %v1868_v43  ;;  %935 = vmatpush.msra.mxu1 %v1863_v42 }
 0x730   :  { %961 = vmatpush.msra.mxu2 %v1877_v45  ;;  %936 = vmatpush.msra.mxu1 %v1870_v44 }
 0x732   :  { %962 = vmatpush.msra.mxu2 %v1884_v47  ;;  %937 = vmatpush.msra.mxu1 %v1879_v46 }
 0x734   :  { %963 = vmatpush.msra.mxu2 %v1895_v49  ;;  %938 = vmatpush.msra.mxu1 %v1890_v48 }
 0x796   :  { %v538_v21 = vpop.f32.mrf.mxu0 }
 0x7aa   :  { %v563_v22 = vpop.f32.mrf.mxu1 }
 0x7ab   :  { %v564_v24 = vadd.f32 %v563_v22, %v538_v21 }
 0x7ad   :  { %v567_v25 = vadd.f32 %v566_v23, %v564_v24 }
 0x7af   :  { %v568_v26 = vmul.f32 0.5, %v567_v25 }
 0x7b0   :  { %v618_v29 = vpop.f32.mrf.mxu2 }
 0x7b1   :  { %v569_v30 = vsel %vm1845_vm4, %v567_v25, %v568_v26  ;;  %v621_v31 = vadd.f32 %v618_v29, %v596_v28 }
 0x7b2   :  { %1449 = vtanh.f32 %v569_v30 }
 0x7b3   :  { %v622_v32 = vmul.f32 0.5, %v621_v31 }
 0x7b5   :  { %v623_v33 = vsel %vm1845_vm4, %v621_v31, %v622_v32 }
 0x7b6   :  { %1451 = vtanh.f32 %v623_v33 }
 0x7b8   :  { %v1450_v34 = vpop.eup %1449 }
 0x7b9   :  { %v571_v35 = vadd.f32 1.0, %v1450_v34 }
 0x7bb   :  { %v572_v36 = vmul.f32 0.5, %v571_v35 }
 0x7bc   :  { %v1452_v37 = vpop.eup %1451 }
 0x7bd   :  { %v573_v38 = vsel %vm1845_vm4, %v1450_v34, %v572_v36  ;;  %v625_v39 = vadd.f32 1.0, %v1452_v37 }
 0x7be   :  { %576 = vrot.lane.b32.xlu1 %v573_v38, %s1670_s1  ;;  %v574_v58 = vmul.f32 %v573_v38, %v1994_v12 }
 0x7bf   :  { %v626_v40 = vmul.f32 0.5, %v625_v39 }
 0x7c1   :  { %v627_v41 = vsel %vm1845_vm4, %v1452_v37, %v626_v40 }
 0x7c2   :  { %630 = vrot.lane.b32.xlu2 %v627_v41, %s1670_s1  ;;  %v628_v54 = vmul.f32 %v627_v41, %v1991_v9 }
 0x81c   :  { %v631_v50 = vpop.permute.xlu2 %630 }
 0x81d   :  { %v633_v51 = vmul.f32 %v631_v50, %v627_v41  ;;  %v864_v50 = vld [vmem:[#allocation3 + $0x5] sm:$0x1] }
 0x81f   :  { %635 = vrot.lane.b32.xlu1 %v633_v51, %s1671_s24 }
 0x830   :  { %v577_v52 = vpop.permute.xlu1 %576 }
 0x831   :  { %v579_v53 = vmul.f32 %v577_v52, %v573_v38 }
 0x833   :  { %581 = vrot.lane.b32.xlu0 %v579_v53, %s1671_s24 }
 0x891   :  { %v636_v55 = vpop.permute.xlu1 %635 }
 0x892   :  { %v2030_v56 = vadd.f32 %v636_v55, %v628_v54 }
 0x894   :  { %1453 = vtanh.f32 %v2030_v56 }
 0x89a   :  { %v1454_v57 = vpop.eup %1453 }
 0x89b   :  { %641 = vrot.lane.b32.xlu0 %v1454_v57, %s1670_s1 }
 0x8a5   :  { %v582_v59 = vpop.permute.xlu0 %581 }
 0x8a6   :  { %v584_v60 = vadd.f32 %v582_v59, %v574_v58  ;;  %v834_v58 = vld [vmem:[#allocation10] sm:$0x1] }
 0x8a8   :  { %1455 = vtanh.f32 %v584_v60 }
 0x8ae   :  { %v1456_v61 = vpop.eup %1455 }
 0x8af   :  { %587 = vrot.lane.b32.xlu2 %v1456_v61, %s1670_s1 }
 0x909   :  { %v588_v62 = vpop.permute.xlu2 %587 }
 0x90a   :  { %v590_v63 = vmul.f32 %v588_v62, %v573_v38 }
 0x90c   :  { %592 = vrot.lane.b32.xlu1 %v590_v63, %s1671_s24 }
 0x90d   :  { %v642_v0 = vpop.permute.xlu0 %641 }
 0x90e   :  { %v644_v1 = vmul.f32 %v642_v0, %v627_v41 }
 0x910   :  { %676 = vrot.lane.b32.xlu2 %v644_v1, %s1671_s24 }
 0x96a   :  { %v677_v2 = vpop.permute.xlu2 %676 }
 0x96b   :  { %1400 = vmatmul.msk.f32.vlgmr.msrb.gmra.mxu0 %vm104_vm0, %v677_v2  ;;  %1401 = vmatmul.msk.f32.vlgmr.msrb.gmra.mxu1 %vm104_vm0, %v677_v2 }
 0x96c   :  { %1094 = vmatpush.msrb.mxu1 %v1868_v43  ;;  %1069 = vmatpush.msrb.mxu0 %v1863_v42  ;;  %v730_v42 = vld [vmem:[#allocation3 + $0x4] sm:$0x1] }
 0x96e   :  { %1095 = vmatpush.msrb.mxu1 %v1877_v45  ;;  %1070 = vmatpush.msrb.mxu0 %v1870_v44 }
 0x970   :  { %1096 = vmatpush.msrb.mxu1 %v1884_v47  ;;  %1071 = vmatpush.msrb.mxu0 %v1879_v46 }
 0x972   :  { %1097 = vmatpush.msrb.mxu1 %v1895_v49  ;;  %1072 = vmatpush.msrb.mxu0 %v1890_v48 }
 0x97e   :  { %v593_v5 = vpop.permute.xlu1 %592 }
 0x97f   :  { %595 = vst.msk [vmem:[#allocation4 + $0x2] sm:$0x1] %vm110_vm1, %v593_v5  ;;  %1399 = vmatmul.msk.f32.vlgmr.msra.gmra.mxu3 %vm104_vm0, %v593_v5 }
 0x980   :  { %1015 = vmatpush.msra.mxu3 %v1773_v3 }
 0x982   :  { %1016 = vmatpush.msra.mxu3 %v1778_v4 }
 0x984   :  { %1017 = vmatpush.msra.mxu3 %v1788_v6 }
 0x986   :  { %1018 = vmatpush.msra.mxu3 %v1797_v8 }
 0x9e8   :  { %v752_v43 = vpop.f32.mrf.mxu1  ;;  %v697_v12 = vpop.f32.mrf.mxu0 }
 0x9e9   :  { %v755_v44 = vadd.f32 %v752_v43, %v730_v42 }
 0x9eb   :  { %v756_v46 = vmul.f32 0.5, %v755_v44 }
 0x9ed   :  { %v757_v48 = vsel %vm1845_vm4, %v755_v44, %v756_v46 }
 0x9ee   :  { %1457 = vtanh.f32 %v757_v48 }
 0x9f4   :  { %v1458_v7 = vpop.eup %1457 }
 0x9f5   :  { %v759_v9 = vadd.f32 1.0, %v1458_v7 }
 0x9f7   :  { %v760_v10 = vmul.f32 0.5, %v759_v9 }
 0x9f9   :  { %v761_v11 = vsel %vm1845_vm4, %v1458_v7, %v760_v10 }
 0x9fa   :  { %764 = vrot.lane.b32.xlu1 %v761_v11, %s1670_s1  ;;  %v762_v28 = vmul.f32 %v761_v11, %v2030_v56 }
 0xa02   :  { %v672_v13 = vpop.f32.mrf.mxu3 }
 0xa03   :  { %v698_v15 = vadd.f32 %v697_v12, %v672_v13 }
 0xa05   :  { %v701_v16 = vadd.f32 %v700_v14, %v698_v15 }
 0xa07   :  { %v702_v17 = vmul.f32 0.5, %v701_v16 }
 0xa09   :  { %v703_v18 = vsel %vm1845_vm4, %v701_v16, %v702_v17 }
 0xa0a   :  { %1459 = vtanh.f32 %v703_v18 }
 0xa10   :  { %v1460_v19 = vpop.eup %1459 }
 0xa11   :  { %v705_v20 = vadd.f32 1.0, %v1460_v19 }
 0xa13   :  { %v706_v21 = vmul.f32 0.5, %v705_v20 }
 0xa15   :  { %v707_v22 = vsel %vm1845_vm4, %v1460_v19, %v706_v21  ;;  %v998_v19 = vld [vmem:[#allocation3 + $0x6] sm:$0x1] }
 0xa16   :  { %710 = vrot.lane.b32.xlu0 %v707_v22, %s1670_s1  ;;  %v708_v31 = vmul.f32 %v707_v22, %v584_v60 }
 0xa6c   :  { %v765_v23 = vpop.permute.xlu1 %764 }
 0xa6d   :  { %v767_v24 = vmul.f32 %v765_v23, %v761_v11 }
 0xa6f   :  { %769 = vrot.lane.b32.xlu0 %v767_v24, %s1671_s24 }
 0xa88   :  { %v711_v25 = vpop.permute.xlu0 %710 }
 0xa89   :  { %v713_v26 = vmul.f32 %v711_v25, %v707_v22 }
 0xa8b   :  { %715 = vrot.lane.b32.xlu2 %v713_v26, %s1671_s24 }
 0xae1   :  { %v770_v29 = vpop.permute.xlu0 %769 }
 0xae2   :  { %v772_v30 = vadd.f32 %v770_v29, %v762_v28 }
 0xae4   :  { %1461 = vtanh.f32 %v772_v30 }
 0xae5   :  { %v716_v32 = vpop.permute.xlu2 %715 }
 0xae6   :  { %v718_v33 = vadd.f32 %v716_v32, %v708_v31  ;;  %v968_v31 = vld [vmem:[#allocation10] sm:$0x1] }
 0xae8   :  { %1463 = vtanh.f32 %v718_v33 }
 0xaea   :  { %v1462_v34 = vpop.eup %1461 }
 0xaeb   :  { %775 = vrot.lane.b32.xlu2 %v1462_v34, %s1670_s1 }
 0xaee   :  { %v1464_v35 = vpop.eup %1463 }
 0xaef   :  { %721 = vrot.lane.b32.xlu1 %v1464_v35, %s1670_s1 }
 0xb45   :  { %v776_v36 = vpop.permute.xlu2 %775 }
 0xb46   :  { %v778_v37 = vmul.f32 %v776_v36, %v761_v11 }
 0xb48   :  { %810 = vrot.lane.b32.xlu1 %v778_v37, %s1671_s24 }
 0xb61   :  { %v722_v38 = vpop.permute.xlu1 %721 }
 0xb62   :  { %v724_v39 = vmul.f32 %v722_v38, %v707_v22 }
 0xb64   :  { %726 = vrot.lane.b32.xlu0 %v724_v39, %s1671_s24 }
 0xbba   :  { %v811_v40 = vpop.permute.xlu1 %810 }
 0xbbb   :  { %1403 = vmatmul.msk.f32.vlgmr.msrb.gmra.mxu3 %vm104_vm0, %v811_v40  ;;  %1404 = vmatmul.msk.f32.vlgmr.msra.gmra.mxu0 %vm104_vm0, %v811_v40 }
 0xbd6   :  { %v727_v41 = vpop.permute.xlu0 %726 }
 0xbd7   :  { %729 = vst.msk [vmem:[#allocation4 + $0x3] sm:$0x1] %vm110_vm1, %v727_v41  ;;  %1402 = vmatmul.msk.f32.vlgmr.msrb.gmra.mxu2 %vm104_vm0, %v727_v41 }
 0xbd8   :  { %1149 = vmatpush.msrb.mxu2 %v1773_v3 }
 0xbda   :  { %1150 = vmatpush.msrb.mxu2 %v1778_v4 }
 0xbdc   :  { %1151 = vmatpush.msrb.mxu2 %v1788_v6 }
 0xbde   :  { %1152 = vmatpush.msrb.mxu2 %v1797_v8 }
 0xc38   :  { %v886_v51 = vpop.f32.mrf.mxu0 }
 0xc39   :  { %v889_v52 = vadd.f32 %v886_v51, %v864_v50 }
 0xc3b   :  { %v890_v53 = vmul.f32 0.5, %v889_v52 }
 0xc3d   :  { %v891_v54 = vsel %vm1845_vm4, %v889_v52, %v890_v53 }
 0xc3e   :  { %1465 = vtanh.f32 %v891_v54  ;;  %v831_v4 = vpop.f32.mrf.mxu3 }
 0xc44   :  { %v1466_v55 = vpop.eup %1465 }
 0xc45   :  { %v893_v56 = vadd.f32 1.0, %v1466_v55 }
 0xc47   :  { %v894_v57 = vmul.f32 0.5, %v893_v56 }
 0xc49   :  { %v895_v3 = vsel %vm1845_vm4, %v1466_v55, %v894_v57 }
 0xc4a   :  { %898 = vrot.lane.b32.xlu2 %v895_v3, %s1670_s1  ;;  %v896_v44 = vmul.f32 %v895_v3, %v772_v30 }
 0xc5a   :  { %v806_v6 = vpop.f32.mrf.mxu2 }
 0xc5b   :  { %v832_v8 = vadd.f32 %v831_v4, %v806_v6 }
 0xc5d   :  { %v835_v59 = vadd.f32 %v834_v58, %v832_v8 }
 0xc5f   :  { %v836_v60 = vmul.f32 0.5, %v835_v59 }
 0xc61   :  { %v837_v61 = vsel %vm1845_vm4, %v835_v59, %v836_v60 }
 0xc62   :  { %1467 = vtanh.f32 %v837_v61 }
 0xc68   :  { %v1468_v62 = vpop.eup %1467 }
 0xc69   :  { %v839_v63 = vadd.f32 1.0, %v1468_v62 }
 0xc6b   :  { %v840_v0 = vmul.f32 0.5, %v839_v63 }
 0xc6d   :  { %v841_v1 = vsel %vm1845_vm4, %v1468_v62, %v840_v0  ;;  %v1132_v62 = vld [vmem:[#allocation3 + $0x7] sm:$0x1] }
 0xc6e   :  { %844 = vrot.lane.b32.xlu0 %v841_v1, %s1670_s1  ;;  %v842_v9 = vmul.f32 %v841_v1, %v718_v33 }
 0xca4   :  { %v899_v2 = vpop.permute.xlu2 %898 }
 0xca5   :  { %v901_v5 = vmul.f32 %v899_v2, %v895_v3 }
 0xca7   :  { %903 = vrot.lane.b32.xlu1 %v901_v5, %s1671_s24 }
 0xce0   :  { %v845_v42 = vpop.permute.xlu0 %844 }
 0xce1   :  { %v847_v43 = vmul.f32 %v845_v42, %v841_v1 }
 0xce3   :  { %849 = vrot.lane.b32.xlu2 %v847_v43, %s1671_s24 }
 0xd19   :  { %v904_v46 = vpop.permute.xlu1 %903 }
 0xd1a   :  { %v906_v48 = vadd.f32 %v904_v46, %v896_v44 }
 0xd1c   :  { %1469 = vtanh.f32 %v906_v48 }
 0xd22   :  { %v1470_v7 = vpop.eup %1469 }
 0xd23   :  { %909 = vrot.lane.b32.xlu0 %v1470_v7, %s1670_s1  ;;  %v1102_v7 = vld [vmem:[#allocation10] sm:$0x1] }
 0xd3d   :  { %v850_v10 = vpop.permute.xlu2 %849 }
 0xd3e   :  { %v852_v11 = vadd.f32 %v850_v10, %v842_v9 }
 0xd40   :  { %1471 = vtanh.f32 %v852_v11 }
 0xd46   :  { %v1472_v12 = vpop.eup %1471 }
 0xd47   :  { %855 = vrot.lane.b32.xlu1 %v1472_v12, %s1670_s1 }
 0xd95   :  { %v910_v13 = vpop.permute.xlu0 %909 }
 0xd96   :  { %v912_v14 = vmul.f32 %v910_v13, %v895_v3 }
 0xd98   :  { %944 = vrot.lane.b32.xlu2 %v912_v14, %s1671_s24 }
 0xdb9   :  { %v856_v15 = vpop.permute.xlu1 %855 }
 0xdba   :  { %v858_v16 = vmul.f32 %v856_v15, %v841_v1 }
 0xdbc   :  { %860 = vrot.lane.b32.xlu0 %v858_v16, %s1671_s24 }
 0xdf2   :  { %v945_v17 = vpop.permute.xlu2 %944 }
 0xdf3   :  { %1406 = vmatmul.msk.f32.vlgmr.msra.gmra.mxu2 %vm104_vm0, %v945_v17  ;;  %1407 = vmatmul.msk.f32.vlgmr.msra.gmra.mxu3 %vm104_vm0, %v945_v17 }
 0xe2e   :  { %v861_v18 = vpop.permute.xlu0 %860 }
 0xe2f   :  { %863 = vst.msk [vmem:[#allocation4 + $0x4] sm:$0x1] %vm110_vm1, %v861_v18  ;;  %1405 = vmatmul.msk.f32.vlgmr.msra.gmra.mxu1 %vm104_vm0, %v861_v18 }
 0xe30   :  { %1303 = vmatpush.msra.mxu1 %v1283_v27 }
 0xe76   :  { %v1020_v20 = vpop.f32.mrf.mxu3  ;;  %v965_v29 = vpop.f32.mrf.mxu2 }
 0xe77   :  { %v1023_v21 = vadd.f32 %v1020_v20, %v998_v19 }
 0xe79   :  { %v1024_v22 = vmul.f32 0.5, %v1023_v21 }
 0xe7b   :  { %v1025_v23 = vsel %vm1845_vm4, %v1023_v21, %v1024_v22 }
 0xe7c   :  { %1473 = vtanh.f32 %v1025_v23 }
 0xe82   :  { %v1474_v24 = vpop.eup %1473 }
 0xe83   :  { %v1027_v25 = vadd.f32 1.0, %v1474_v24 }
 0xe85   :  { %v1028_v26 = vmul.f32 0.5, %v1027_v25 }
 0xe87   :  { %v1029_v28 = vsel %vm1845_vm4, %v1474_v24, %v1028_v26 }
 0xe88   :  { %1032 = vrot.lane.b32.xlu2 %v1029_v28, %s1670_s1  ;;  %v1030_v52 = vmul.f32 %v1029_v28, %v906_v48 }
 0xeac   :  { %v940_v30 = vpop.f32.mrf.mxu1 }
 0xead   :  { %v966_v32 = vadd.f32 %v965_v29, %v940_v30 }
 0xeaf   :  { %v969_v33 = vadd.f32 %v968_v31, %v966_v32  ;;  %v1184_v32 = vld [vmem:[%s2175_s5 + $0x18] sm:$0xff]  ;;  %s1672_s5 = smov 96  }
 0xeb0   :  { %1228 = vmatpush.msra.mxu0 %v1184_v32 }
 0xeb1   :  { %v970_v34 = vmul.f32 0.5, %v969_v33 }
 0xeb2   :  { %1229 = vmatpush.msra.mxu0 %v1877_v45 }
 0xeb3   :  { %v971_v35 = vsel %vm1845_vm4, %v969_v33, %v970_v34 }
 0xeb4   :  { %1475 = vtanh.f32 %v971_v35  ;;  %1230 = vmatpush.msra.mxu0 %v1884_v47  ;;  %v1188_v35 = vld [vmem:[#allocation9 + $0x18] sm:$0xff] }
 0xeb5   :  { %1203 = vmatpush.msrb.mxu3 %v1188_v35 }
 0xeb6   :  { %1231 = vmatpush.msra.mxu0 %v1895_v49 }
 0xeba   :  { %v1476_v36 = vpop.eup %1475 }
 0xebb   :  { %v973_v37 = vadd.f32 1.0, %v1476_v36 }
 0xebd   :  { %v974_v38 = vmul.f32 0.5, %v973_v37  ;;  %v1186_v37 = vld [vmem:[#allocation9 + $0x8] sm:$0xff] }
 0xebf   :  { %v975_v39 = vsel %vm1845_vm4, %v1476_v36, %v974_v38  ;;  %v1187_v36 = vld [vmem:[#allocation9 + $0x10] sm:$0xff]  ;;  %v1185_v38 = vld [vmem:[#allocation9] sm:$0xff] }
 0xec0   :  { %978 = vrot.lane.b32.xlu1 %v975_v39, %s1670_s1  ;;  %v976_v56 = vmul.f32 %v975_v39, %v852_v11  ;;  %1204 = vmatpush.msrb.mxu3 %v1187_v36 }
 0xec2   :  { %1205 = vmatpush.msrb.mxu3 %v1186_v37 }
 0xec4   :  { %1206 = vmatpush.msrb.mxu3 %v1185_v38 }
 0xee2   :  { %v1033_v40 = vpop.permute.xlu2 %1032 }
 0xee3   :  { %v1035_v41 = vmul.f32 %v1033_v40, %v1029_v28  ;;  %v1236_v40 = vld [vmem:[#allocation10] sm:$0x1] }
 0xee5   :  { %1037 = vrot.lane.b32.xlu1 %v1035_v41, %s1671_s24 }
 0xf32   :  { %v979_v50 = vpop.permute.xlu1 %978 }
 0xf33   :  { %v981_v51 = vmul.f32 %v979_v50, %v975_v39 }
 0xf35   :  { %983 = vrot.lane.b32.xlu0 %v981_v51, %s1671_s24 }
 0xf57   :  { %v1038_v53 = vpop.permute.xlu1 %1037 }
 0xf58   :  { %v1040_v54 = vadd.f32 %v1038_v53, %v1030_v52 }
 0xf5a   :  { %1477 = vtanh.f32 %v1040_v54 }
 0xf60   :  { %v1478_v55 = vpop.eup %1477 }
 0xf61   :  { %1043 = vrot.lane.b32.xlu0 %v1478_v55, %s1670_s1 }
 0xfa7   :  { %v984_v57 = vpop.permute.xlu0 %983 }
 0xfa8   :  { %v986_v3 = vadd.f32 %v984_v57, %v976_v56 }
 0xfaa   :  { %1479 = vtanh.f32 %v986_v3 }
 0xfb0   :  { %v1480_v4 = vpop.eup %1479 }
 0xfb1   :  { %989 = vrot.lane.b32.xlu2 %v1480_v4, %s1670_s1 }
 0xfd3   :  { %v1044_v6 = vpop.permute.xlu0 %1043 }
 0xfd4   :  { %v1046_v58 = vmul.f32 %v1044_v6, %v1029_v28 }
 0xfd6   :  { %1078 = vrot.lane.b32.xlu2 %v1046_v58, %s1671_s24 }
0x100b   :  { %v990_v8 = vpop.permute.xlu2 %989 }
0x100c   :  { %v992_v59 = vmul.f32 %v990_v8, %v975_v39 }
0x100e   :  { %994 = vrot.lane.b32.xlu1 %v992_v59, %s1671_s24 }
0x1030   :  { %v1079_v60 = vpop.permute.xlu2 %1078 }
0x1031   :  { %1409 = vmatmul.msk.f32.vlgmr.msrb.gmra.mxu1 %vm104_vm0, %v1079_v60  ;;  %1410 = vmatmul.msk.f32.vlgmr.msrb.gmra.mxu2 %vm104_vm0, %v1079_v60 }
0x1080   :  { %v995_v61 = vpop.permute.xlu1 %994 }
0x1081   :  { %997 = vst.msk [vmem:[#allocation4 + $0x5] sm:$0x1] %vm110_vm1, %v995_v61  ;;  %1408 = vmatmul.msk.f32.vlgmr.msrb.gmra.mxu0 %vm104_vm0, %v995_v61  ;;  %v1282_v61 = vld [vmem:[#allocation12 + $0x10] sm:$0xff] }
0x1082   :  { %1304 = vmatpush.msra.mxu1 %v1282_v61 }
0x10ae   :  { %v1099_v46 = vpop.f32.mrf.mxu1 }
0x10b4   :  { %v1154_v63 = vpop.f32.mrf.mxu2 }
0x10b5   :  { %v1157_v0 = vadd.f32 %v1154_v63, %v1132_v62  ;;  %v1281_v62 = vld [vmem:[#allocation12 + $0x8] sm:$0xff]  ;;  %v1280_v63 = vld [vmem:[#allocation12] sm:$0xff] }
0x10b6   :  { %1305 = vmatpush.msra.mxu1 %v1281_v62 }
0x10b7   :  { %v1158_v1 = vmul.f32 0.5, %v1157_v0 }
0x10b8   :  { %1306 = vmatpush.msra.mxu1 %v1280_v63 }
0x10b9   :  { %v1159_v2 = vsel %vm1845_vm4, %v1157_v0, %v1158_v1 }
0x10ba   :  { %1481 = vtanh.f32 %v1159_v2 }
0x10c0   :  { %v1482_v5 = vpop.eup %1481 }
0x10c1   :  { %v1161_v42 = vadd.f32 1.0, %v1482_v5 }
0x10c3   :  { %v1162_v43 = vmul.f32 0.5, %v1161_v42  ;;  %v1428_v42 = vld [vmem:[%s2179_s9] ss:$0 sm:$0xff]  ;;  %s1350_s9 = sshll.u32 %s1674_s3, 4  ;;  %s1351_s9 = int_to_ptr.vmem [resolvable:$true] %s1350_s9 }
0x10c5   :  { %v1163_v44 = vsel %vm1845_vm4, %v1482_v5, %v1162_v43 }
0x10c6   :  { %1166 = vrot.lane.b32.xlu1 %v1163_v44, %s1670_s1  ;;  %v1164_v21 = vmul.f32 %v1163_v44, %v1040_v54 }
0x10fe   :  { %v1074_v48 = vpop.f32.mrf.mxu0 }
0x10ff   :  { %v1100_v9 = vadd.f32 %v1099_v46, %v1074_v48 }
0x1101   :  { %v1103_v10 = vadd.f32 %v1102_v7, %v1100_v9 }
0x1103   :  { %v1104_v11 = vmul.f32 0.5, %v1103_v10 }
0x1105   :  { %v1105_v12 = vsel %vm1845_vm4, %v1103_v10, %v1104_v11 }
0x1106   :  { %1483 = vtanh.f32 %v1105_v12 }
0x110c   :  { %v1484_v13 = vpop.eup %1483 }
0x110d   :  { %v1107_v14 = vadd.f32 1.0, %v1484_v13 }
0x110f   :  { %v1108_v15 = vmul.f32 0.5, %v1107_v14 }
0x1111   :  { %v1109_v16 = vsel %vm1845_vm4, %v1484_v13, %v1108_v15 }
0x1112   :  { %1112 = vrot.lane.b32.xlu0 %v1109_v16, %s1670_s1  ;;  %v1110_v25 = vmul.f32 %v1109_v16, %v986_v3 }
0x1138   :  { %v1167_v17 = vpop.permute.xlu1 %1166 }
0x1139   :  { %v1169_v18 = vmul.f32 %v1167_v17, %v1163_v44 }
0x113b   :  { %1171 = vrot.lane.b32.xlu0 %v1169_v18, %s1671_s24 }
0x1184   :  { %v1113_v19 = vpop.permute.xlu0 %1112 }
0x1185   :  { %v1115_v20 = vmul.f32 %v1113_v19, %v1109_v16 }
0x1187   :  { %1117 = vrot.lane.b32.xlu2 %v1115_v20, %s1671_s24 }
0x11ad   :  { %v1172_v22 = vpop.permute.xlu0 %1171 }
0x11ae   :  { %v1174_v23 = vadd.f32 %v1172_v22, %v1164_v21 }
0x11b0   :  { %1485 = vtanh.f32 %v1174_v23 }
0x11b6   :  { %v1486_v24 = vpop.eup %1485 }
0x11b7   :  { %1177 = vrot.lane.b32.xlu2 %v1486_v24, %s1670_s1 }
0x11e1   :  { %v1118_v26 = vpop.permute.xlu2 %1117 }
0x11e2   :  { %v1120_v28 = vadd.f32 %v1118_v26, %v1110_v25 }
0x11e4   :  { %1487 = vtanh.f32 %v1120_v28 }
0x11ea   :  { %v1488_v29 = vpop.eup %1487 }
0x11eb   :  { %1123 = vrot.lane.b32.xlu1 %v1488_v29, %s1670_s1 }
0x1211   :  { %v1178_v30 = vpop.permute.xlu2 %1177 }
0x1212   :  { %v1180_v31 = vmul.f32 %v1178_v30, %v1163_v44 }
0x1214   :  { %1212 = vrot.lane.b32.xlu1 %v1180_v31, %s1671_s24 }
0x125d   :  { %v1124_v33 = vpop.permute.xlu1 %1123 }
0x125e   :  { %v1126_v34 = vmul.f32 %v1124_v33, %v1109_v16 }
0x1260   :  { %1128 = vrot.lane.b32.xlu0 %v1126_v34, %s1671_s24 }
0x1286   :  { %v1213_v39 = vpop.permute.xlu1 %1212 }
0x1287   :  { %1267 = vst.msk [vmem:[#allocation14] sm:$0x1] %vm110_vm1, %v1213_v39  ;;  %1412 = vmatmul.msk.f32.vlgmr.msra.gmra.mxu0 %vm104_vm0, %v1213_v39 }
0x12d2   :  { %v1129_v45 = vpop.permute.xlu0 %1128 }
0x12d3   :  { %1131 = vst.msk [vmem:[#allocation4 + $0x6] sm:$0x1] %vm110_vm1, %v1129_v45  ;;  %1411 = vmatmul.msk.f32.vlgmr.msrb.gmra.mxu3 %vm104_vm0, %v1129_v45 }
0x1304   :  { %v1233_v47 = vpop.f32.mrf.mxu0 }
0x1356   :  { %v1208_v49 = vpop.f32.mrf.mxu3 }
0x1357   :  { %v1234_v41 = vadd.f32 %v1233_v47, %v1208_v49 }
0x1359   :  { %v1237_v50 = vadd.f32 %v1236_v40, %v1234_v41 }
0x135b   :  { %v1238_v51 = vmul.f32 0.5, %v1237_v50 }
0x135d   :  { %v1239_v52 = vsel %vm1845_vm4, %v1237_v50, %v1238_v51 }
0x135e   :  { %1489 = vtanh.f32 %v1239_v52 }
0x1364   :  { %v1490_v53 = vpop.eup %1489 }
0x1365   :  { %v1241_v54 = vadd.f32 1.0, %v1490_v53 }
0x1367   :  { %v1242_v55 = vmul.f32 0.5, %v1241_v54 }
0x1369   :  { %v1243_v56 = vsel %vm1845_vm4, %v1490_v53, %v1242_v55 }
0x136a   :  { %1246 = vrot.lane.b32.xlu2 %v1243_v56, %s1670_s1  ;;  %v1244_v4 = vmul.f32 %v1243_v56, %v1120_v28 }
0x13c4   :  { %v1247_v57 = vpop.permute.xlu2 %1246 }
0x13c5   :  { %v1249_v3 = vmul.f32 %v1247_v57, %v1243_v56 }
0x13c7   :  { %1251 = vrot.lane.b32.xlu0 %v1249_v3, %s1671_s24 }
0x1439   :  { %v1252_v6 = vpop.permute.xlu0 %1251 }
0x143a   :  { %v1254_v58 = vadd.f32 %v1252_v6, %v1244_v4 }
0x143c   :  { %1491 = vtanh.f32 %v1254_v58 }
0x1442   :  { %v1492_v8 = vpop.eup %1491 }
0x1443   :  { %1257 = vrot.lane.b32.xlu1 %v1492_v8, %s1670_s1 }
0x14b5   :  { %v1258_v59 = vpop.permute.xlu1 %1257 }
0x14b6   :  { %v1260_v60 = vmul.f32 %v1258_v59, %v1243_v56 }
0x14b8   :  { %1262 = vrot.lane.b32.xlu2 %v1260_v60, %s1671_s24  ;;  %s1328_s24 = sshll.u32 %s1675_s13, 4  ;;  %s1329_s24 = int_to_ptr.vmem [resolvable:$true] %s1328_s24 }
0x14c0   :  { %1270 = vrot.lane.b32.xlu2 %v1174_v23, %s1672_s5 }
0x14c8   :  { %1275 = vrot.lane.b32.xlu2 %v1254_v58, %s1672_s5 }
0x1512   :  { %v1263_v0 = vpop.permute.xlu2 %1262 }
0x1513   :  { %1265 = vst.msk [vmem:[#allocation4 + $0x7] sm:$0x1] %vm110_vm1, %v1263_v0 }
0x1514   :  { %1268 = vst.msk [vmem:[#allocation14 + $0x1] sm:$0x1] %vm110_vm1, %v1263_v0 }
0x1515   :  { %1344 = dma.vmem_to_hbm [thread:$0]  %s1340_s16, 32, %s1342_s22, [#allocation15]  }
0x151a   :  { %v1271_v1 = vpop.permute.xlu2 %1270  ;;  %v1279_v2 = vld [vmem:[#allocation4] sm:$0xff] }
0x151b   :  { %1273 = vst.msk [vmem:[#allocation16] sm:$0x1] %vm110_vm1, %v1271_v1  ;;  %1413 = vmatmul.msk.f32.vlgmr.msra.gmra.mxu1 %vm104_vm0, %v1279_v2 }
0x1522   :  { %v1276_v5 = vpop.permute.xlu2 %1275 }
0x1523   :  { %1278 = vst.msk [vmem:[#allocation16 + $0x1] sm:$0x1] %vm110_vm1, %v1276_v5 }
0x1524   :  { %1355 = dma.vmem_to_hbm [thread:$0]  %s1351_s9, 32, %s1353_s21, [#allocation15]  }
0x1598   :  { %v1308_v43 = vpop.f32.mrf.mxu1 }
0x1599   :  { %v1309_v44 = vadd.f32 %v1428_v42, %v1308_v43 }
0x159b   :  { %1311 = vmax.xlane.f32.xlu0 %v1309_v44 }
0x160e   :  { %v1312_v46 = vpop.xlane.xlu0 %1311 }
0x160f   :  { %v1313_v48 = vsub.f32 %v1309_v44, %v1312_v46 }
0x1611   :  { %v1314_v7 = vmul.f32 1.442695, %v1313_v48 }
0x1613   :  { %1493 = vpow2.f32 %v1314_v7 }
0x1619   :  { %v1494_v9 = vpop.eup %1493 }
0x161a   :  { %1316 = vadd.xlane.f32.xlu1 %v1494_v9 }
0x168d   :  { %v1317_v10 = vpop.xlane.xlu1 %1316 }
0x168e   :  { %1495 = vlog2.f32 %v1317_v10 }
0x1694   :  { %v1496_v11 = vpop.eup %1495 }
0x1695   :  { %v1319_v12 = vmul.f32 0.6931472, %v1496_v11 }
0x1697   :  { %v1320_v13 = vadd.f32 %v1319_v12, %v1312_v46 }
0x1699   :  { %v1321_v14 = vsub.f32 %v1309_v44, %v1320_v13 }
0x169b   :  { %1322 = vst [vmem:[#allocation13] sm:$0xff] %v1321_v14 }
0x169c   :  { %1333 = dma.vmem_to_hbm [thread:$0]  %s1329_s24, 128, %s1331_s28, [#allocation7]  }
0x169d   :  { %1659 = dma.done.wait [#allocation7], 128  }
0x169e   :  { %1660 = vsyncadd [#allocation7], 4294967168 }
0x169f   :  { %1661 = dma.done.wait [#allocation15], 64  }
0x16a0   :  { %1662 = vsyncadd [#allocation15], 4294967232 }
0x16a1   :  { %1368 = vsyncpa [#allocation6], 1 }
0x16a2   :  { %1369 = vsyncpa [#allocation11], 1 }
0x16a3   :  { %1370 = vsyncpa [#allocation7], 1 }
0x16a4   :  { %1371 = vsyncpa [#allocation15], 1 }
0x16a5   :  { %1372 = vsyncpa [#allocation8], 1 }

</bundles_post_ra>
